<compile_context>
chip_gen: v5e
topology: v5e:2x2
jax: 0.10.0
libtpu: 0.0.40
codegen_flags: <defaults>
</compile_context>

<pallas_src>
import jax
import jax.numpy as jnp
import numpy as np
from jax.experimental import pallas as pl
from jax.experimental.pallas import tpu as pltpu


# -----------------------------------------------------------------------------
# Fused kernel
# -----------------------------------------------------------------------------
def _gan_v1_fused_kernel(
    x_ref,                                                # (B*H0, W0*C0)
    s1_ref, m1_ref, b1_ref,                               # conv1 + bias
    s2_ref, m2_ref, g2_ref, be2_ref, f2_ref, ft2_ref,     # conv2 + BN
    s3_ref, m3_ref, g3_ref, be3_ref, f3_ref, ft3_ref,     # conv3 + BN
    w4_ref, b4_ref,                                       # conv4 + sigmoid
    o_ref,                                                # (B, 1)
):
    def conv(a, s_ref, m_ref):
        # out[(b,r),(q,d)] = sum_i (S_i @ a) @ M_i   (stride/pad baked into S/M)
        acc = None
        for i in range(s_ref.shape[0]):
            t = jnp.dot(s_ref[i], a, preferred_element_type=jnp.float32)
            t = jnp.dot(t, m_ref[i], preferred_element_type=jnp.float32)
            acc = t if acc is None else acc + t
        return acc

    def lrelu(y):
        return jnp.where(y > 0, y, 0.2 * y)

    def bn_lrelu(y, g_ref, be_ref, f_ref, ft_ref):
        # Training-mode BatchNorm2d over (N,H,W) per channel, folded into a
        # single scale/shift, then LeakyReLU(0.2).
        cout = g_ref.shape[1]
        inv_n = 1.0 / (y.shape[0] * (y.shape[1] // cout))
        # fold the (w, c) column layout down to per-channel sums via F (0/1)
        sum_c = jnp.sum(jnp.dot(y, f_ref[...], preferred_element_type=jnp.float32),
                        axis=0, keepdims=True)                      # (1, Cout)
        sumsq_c = jnp.sum(jnp.dot(y * y, f_ref[...], preferred_element_type=jnp.float32),
                          axis=0, keepdims=True)                    # (1, Cout)
        mean_c = sum_c * inv_n
        var_c = jnp.maximum(sumsq_c * inv_n - mean_c * mean_c, 0.0)  # biased var
        scale_c = g_ref[...] * jax.lax.rsqrt(var_c + 1e-5)
        shift_c = be_ref[...] - mean_c * scale_c
        # expand per-channel scale/shift back to the (w, c) column layout
        scale_cols = jnp.dot(scale_c, ft_ref[...], preferred_element_type=jnp.float32)
        shift_cols = jnp.dot(shift_c, ft_ref[...], preferred_element_type=jnp.float32)
        yn = y * scale_cols + shift_cols
        return jnp.where(yn > 0, yn, 0.2 * yn)

    # Layer 1: Conv(3->16, k3, s2, p1) + bias + LeakyReLU(0.2)
    y1 = lrelu(conv(x_ref[...], s1_ref, m1_ref) + b1_ref[...])
    # Layer 2: Conv(16->32, k3, s2, p1) + BatchNorm2d + LeakyReLU (bias cancels)
    y2 = bn_lrelu(conv(y1, s2_ref, m2_ref), g2_ref, be2_ref, f2_ref, ft2_ref)
    # Layer 3: Conv(32->32, k3, s2, p1) + BatchNorm2d + LeakyReLU
    y3 = bn_lrelu(conv(y2, s3_ref, m3_ref), g3_ref, be3_ref, f3_ref, ft3_ref)

    # Layer 4: Conv(32->1, k4, s1, p0) covers the full remaining 4x4 extent ->
    # per-image elementwise multiply + reduction (VPU/XLU), then sigmoid.
    w4 = w4_ref[...]                       # (KH, KW*C) tap layout
    kh4 = w4_ref.shape[0]
    nb = o_ref.shape[0]
    parts = []
    for b in range(nb):
        zb = y3[b * kh4:(b + 1) * kh4, :] * w4
        sb = jnp.sum(jnp.sum(zb, axis=1, keepdims=True), axis=0, keepdims=True)
        parts.append(sb)
    logits = jnp.concatenate(parts, axis=0) + b4_ref[...]   # (B, 1)
    o_ref[...] = 1.0 / (1.0 + jnp.exp(-logits))


# -----------------------------------------------------------------------------
# Host-side (one-time) construction of the layout/weight operators
# -----------------------------------------------------------------------------
def _conv_matrices(w_oihw, batch, h_in, w_in, stride, pad):
    """Build (S, M) with  conv2d(A) == sum_i S[i] @ A @ M[i]  in the
    2D activation layout A[(b,h), (w,c)]."""
    cout, cin, kh, kw = w_oihw.shape
    wt = np.asarray(w_oihw, np.float32)
    h_out = (h_in + 2 * pad - kh) // stride + 1
    w_out = (w_in + 2 * pad - kw) // stride + 1

    s = np.zeros((kh, batch * h_out, batch * h_in), np.float32)
    for i in range(kh):
        for b in range(batch):
            for r in range(h_out):
                h = stride * r + i - pad
                if 0 <= h < h_in:
                    s[i, b * h_out + r, b * h_in + h] = 1.0

    m = np.zeros((kh, w_in * cin, w_out * cout), np.float32)
    for i in range(kh):
        for q in range(w_out):
            for j in range(kw):
                wc = stride * q + j - pad
                if 0 <= wc < w_in:
                    m[i, wc * cin:(wc + 1) * cin, q * cout:(q + 1) * cout] += wt[:, :, i, j].T
    return jnp.asarray(s), jnp.asarray(m), h_out, w_out


def _fold_matrices(w_out, cout):
    """F: fold (w,c) columns -> per-channel;  FT: expand back."""
    f = np.tile(np.eye(cout, dtype=np.float32), (w_out, 1))    # (w_out*cout, cout)
    return jnp.asarray(f), jnp.asarray(np.ascontiguousarray(f.T))


def prepare_operands(params, batch, height=32, width=32):
    """Precompute every reshaped/structured operand ONCE (outside the jit)."""
    s1, m1, h1, w1 = _conv_matrices(params["w1"], batch, height, width, 2, 1)
    b1c = jnp.asarray(np.tile(np.asarray(params["b1"], np.float32), w1)[None, :])

    s2, m2, h2, w2 = _conv_matrices(params["w2"], batch, h1, w1, 2, 1)
    f2, ft2 = _fold_matrices(w2, params["w2"].shape[0])

    s3, m3, h3, w3 = _conv_matrices(params["w3"], batch, h2, w2, 2, 1)
    f3, ft3 = _fold_matrices(w3, params["w3"].shape[0])

    w4 = np.asarray(params["w4"], np.float32)                  # (1, C3, 4, 4)
    assert w4.shape[0] == 1 and w4.shape[2] == h3 and w4.shape[3] == w3
    w4m = jnp.asarray(np.transpose(w4[0], (1, 2, 0)).reshape(h3, w3 * w4.shape[1]))
    b4 = jnp.asarray(np.asarray(params["b4"], np.float32).reshape(1, 1))

    return (
        s1, m1, b1c,
        s2, m2, params["g2"].reshape(1, -1), params["be2"].reshape(1, -1), f2, ft2,
        s3, m3, params["g3"].reshape(1, -1), params["be3"].reshape(1, -1), f3, ft3,
        w4m, b4,
    )


# -----------------------------------------------------------------------------
# Forward
# -----------------------------------------------------------------------------
@jax.jit
def gan_v1_forward(operands, x_nchw):
    b, c, h, w = x_nchw.shape
    # Only glue: NCHW -> 2D lane-dense layout A[(b,h), (w,c)].
    x2d = jnp.transpose(x_nchw, (0, 2, 3, 1)).astype(jnp.float32).reshape(b * h, w * c)
    vmem = pl.BlockSpec(memory_space=pltpu.MemorySpace.VMEM)
    out = pl.pallas_call(
        _gan_v1_fused_kernel,
        out_shape=jax.ShapeDtypeStruct((b, 1), jnp.float32),
        in_specs=[vmem] * (1 + len(operands)),
        out_specs=vmem,
    )(x2d, *operands)
    # PyTorch: .view(-1) -> (B,) since spatial collapses to 1x1 and Cout=1.
    return out.reshape(-1)


# -----------------------------------------------------------------------------
# Parameters (PyTorch layouts, deterministic)
# -----------------------------------------------------------------------------
def init_params(key):
    ks = jax.random.split(key, 8)
    scale = 0.1

    def conv_w(k, cout, cin, kh, kw):
        return scale * jax.random.normal(k, (cout, cin, kh, kw), jnp.float32)

    return {
        "w1": conv_w(ks[0], 16, 3, 3, 3),
        "b1": scale * jax.random.normal(ks[1], (16,), jnp.float32),
        "w2": conv_w(ks[2], 32, 16, 3, 3),
        "b2": scale * jax.random.normal(ks[3], (32,), jnp.float32),   # cancelled by BN
        "g2": jnp.ones((32,), jnp.float32),
        "be2": jnp.zeros((32,), jnp.float32),
        "w3": conv_w(ks[4], 32, 32, 3, 3),
        "b3": scale * jax.random.normal(ks[5], (32,), jnp.float32),   # cancelled by BN
        "g3": jnp.ones((32,), jnp.float32),
        "be3": jnp.zeros((32,), jnp.float32),
        "w4": conv_w(ks[6], 1, 32, 4, 4),
        "b4": scale * jax.random.normal(ks[7], (1,), jnp.float32),
    }


if __name__ == "__main__":
    key = jax.random.PRNGKey(0)
    pkey, xkey = jax.random.split(key)
    params = init_params(pkey)

    # Architecture implies 32x32 RGB input: 32 -> 16 -> 8 -> 4 -> 1x1.
    x = jax.random.normal(xkey, (2, 3, 32, 32), jnp.float32)  # NCHW

    operands = prepare_operands(params, batch=x.shape[0],
                                height=x.shape[2], width=x.shape[3])

    out = gan_v1_forward(operands, x)
    out = jax.block_until_ready(out)
    assert out.shape == (2,), out.shape
    assert bool(jnp.all(jnp.isfinite(out)))
    assert bool(jnp.all((out >= 0.0) & (out <= 1.0)))
    print("KERNEL_OK")
</pallas_src>

<mosaic_0001>
module attributes {stable_mosaic.version = 11 : i64} {
  func.func @_gan_v1_fused_kernel(%arg0: memref<64x96xf32, #tpu.memory_space<vmem>>, %arg1: memref<3x32x64xf32, #tpu.memory_space<vmem>>, %arg2: memref<3x96x256xf32, #tpu.memory_space<vmem>>, %arg3: memref<1x256xf32, #tpu.memory_space<vmem>>, %arg4: memref<3x16x32xf32, #tpu.memory_space<vmem>>, %arg5: memref<3x256x256xf32, #tpu.memory_space<vmem>>, %arg6: memref<1x32xf32, #tpu.memory_space<vmem>>, %arg7: memref<1x32xf32, #tpu.memory_space<vmem>>, %arg8: memref<256x32xf32, #tpu.memory_space<vmem>>, %arg9: memref<32x256xf32, #tpu.memory_space<vmem>>, %arg10: memref<3x8x16xf32, #tpu.memory_space<vmem>>, %arg11: memref<3x256x128xf32, #tpu.memory_space<vmem>>, %arg12: memref<1x32xf32, #tpu.memory_space<vmem>>, %arg13: memref<1x32xf32, #tpu.memory_space<vmem>>, %arg14: memref<128x32xf32, #tpu.memory_space<vmem>>, %arg15: memref<32x128xf32, #tpu.memory_space<vmem>>, %arg16: memref<4x128xf32, #tpu.memory_space<vmem>>, %arg17: memref<1x1xf32, #tpu.memory_space<vmem>>, %arg18: memref<2x1xf32, #tpu.memory_space<vmem>>) attributes {dimension_semantics = [], scalar_prefetch = 0 : i64, scratch_operands = 0 : i64, tpu.core_type = #tpu.core_type<tc>} {
    %c0 = arith.constant 0 : index
    %c0_0 = arith.constant 0 : index
    %0 = vector.load %arg0[%c0, %c0_0] : memref<64x96xf32, #tpu.memory_space<vmem>>, vector<64x96xf32>
    %c0_1 = arith.constant 0 : index
    %c0_2 = arith.constant 0 : index
    %c0_3 = arith.constant 0 : index
    %1 = vector.load %arg1[%c0_1, %c0_2, %c0_3] : memref<3x32x64xf32, #tpu.memory_space<vmem>>, vector<1x32x64xf32>
    %2 = vector.shape_cast %1 : vector<1x32x64xf32> to vector<32x64xf32>
    %cst = arith.constant dense<0.000000e+00> : vector<32x96xf32>
    %3 = tpu.matmul %2, %0, %cst {dimension_numbers = #tpu.dot_dimension_numbers<[1], [0], [0], [1], [0, 0, 1, 1], [], []>} : vector<32x64xf32>, vector<64x96xf32>, vector<32x96xf32> -> vector<32x96xf32>
    %c0_4 = arith.constant 0 : index
    %c0_5 = arith.constant 0 : index
    %c0_6 = arith.constant 0 : index
    %4 = vector.load %arg2[%c0_4, %c0_5, %c0_6] : memref<3x96x256xf32, #tpu.memory_space<vmem>>, vector<1x96x256xf32>
    %5 = vector.shape_cast %4 : vector<1x96x256xf32> to vector<96x256xf32>
    %cst_7 = arith.constant dense<0.000000e+00> : vector<32x256xf32>
    %6 = tpu.matmul %3, %5, %cst_7 {dimension_numbers = #tpu.dot_dimension_numbers<[1], [0], [0], [1], [0, 0, 1, 1], [], []>} : vector<32x96xf32>, vector<96x256xf32>, vector<32x256xf32> -> vector<32x256xf32>
    %c1 = arith.constant 1 : index
    %c0_8 = arith.constant 0 : index
    %c0_9 = arith.constant 0 : index
    %7 = vector.load %arg1[%c1, %c0_8, %c0_9] : memref<3x32x64xf32, #tpu.memory_space<vmem>>, vector<1x32x64xf32>
    %8 = vector.shape_cast %7 : vector<1x32x64xf32> to vector<32x64xf32>
    %cst_10 = arith.constant dense<0.000000e+00> : vector<32x96xf32>
    %9 = tpu.matmul %8, %0, %cst_10 {dimension_numbers = #tpu.dot_dimension_numbers<[1], [0], [0], [1], [0, 0, 1, 1], [], []>} : vector<32x64xf32>, vector<64x96xf32>, vector<32x96xf32> -> vector<32x96xf32>
    %c1_11 = arith.constant 1 : index
    %c0_12 = arith.constant 0 : index
    %c0_13 = arith.constant 0 : index
    %10 = vector.load %arg2[%c1_11, %c0_12, %c0_13] : memref<3x96x256xf32, #tpu.memory_space<vmem>>, vector<1x96x256xf32>
    %11 = vector.shape_cast %10 : vector<1x96x256xf32> to vector<96x256xf32>
    %cst_14 = arith.constant dense<0.000000e+00> : vector<32x256xf32>
    %12 = tpu.matmul %9, %11, %cst_14 {dimension_numbers = #tpu.dot_dimension_numbers<[1], [0], [0], [1], [0, 0, 1, 1], [], []>} : vector<32x96xf32>, vector<96x256xf32>, vector<32x256xf32> -> vector<32x256xf32>
    %13 = arith.addf %6, %12 : vector<32x256xf32>
    %c2 = arith.constant 2 : index
    %c0_15 = arith.constant 0 : index
    %c0_16 = arith.constant 0 : index
    %14 = vector.load %arg1[%c2, %c0_15, %c0_16] : memref<3x32x64xf32, #tpu.memory_space<vmem>>, vector<1x32x64xf32>
    %15 = vector.shape_cast %14 : vector<1x32x64xf32> to vector<32x64xf32>
    %cst_17 = arith.constant dense<0.000000e+00> : vector<32x96xf32>
    %16 = tpu.matmul %15, %0, %cst_17 {dimension_numbers = #tpu.dot_dimension_numbers<[1], [0], [0], [1], [0, 0, 1, 1], [], []>} : vector<32x64xf32>, vector<64x96xf32>, vector<32x96xf32> -> vector<32x96xf32>
    %c2_18 = arith.constant 2 : index
    %c0_19 = arith.constant 0 : index
    %c0_20 = arith.constant 0 : index
    %17 = vector.load %arg2[%c2_18, %c0_19, %c0_20] : memref<3x96x256xf32, #tpu.memory_space<vmem>>, vector<1x96x256xf32>
    %18 = vector.shape_cast %17 : vector<1x96x256xf32> to vector<96x256xf32>
    %cst_21 = arith.constant dense<0.000000e+00> : vector<32x256xf32>
    %19 = tpu.matmul %16, %18, %cst_21 {dimension_numbers = #tpu.dot_dimension_numbers<[1], [0], [0], [1], [0, 0, 1, 1], [], []>} : vector<32x96xf32>, vector<96x256xf32>, vector<32x256xf32> -> vector<32x256xf32>
    %20 = arith.addf %13, %19 : vector<32x256xf32>
    %c0_22 = arith.constant 0 : index
    %c0_23 = arith.constant 0 : index
    %21 = vector.load %arg3[%c0_22, %c0_23] : memref<1x256xf32, #tpu.memory_space<vmem>>, vector<1x256xf32>
    %22 = vector.broadcast %21 : vector<1x256xf32> to vector<32x256xf32>
    %23 = arith.addf %20, %22 : vector<32x256xf32>
    %cst_24 = arith.constant 0.000000e+00 : f32
    %24 = vector.broadcast %cst_24 : f32 to vector<32x256xf32>
    %25 = arith.cmpf ogt, %23, %24 : vector<32x256xf32>
    %cst_25 = arith.constant 2.000000e-01 : f32
    %26 = vector.broadcast %cst_25 : f32 to vector<32x256xf32>
    %27 = arith.mulf %26, %23 : vector<32x256xf32>
    %28 = arith.select %25, %23, %27 : vector<32x256xi1>, vector<32x256xf32>
    %c0_26 = arith.constant 0 : index
    %c0_27 = arith.constant 0 : index
    %c0_28 = arith.constant 0 : index
    %29 = vector.load %arg4[%c0_26, %c0_27, %c0_28] : memref<3x16x32xf32, #tpu.memory_space<vmem>>, vector<1x16x32xf32>
    %30 = vector.shape_cast %29 : vector<1x16x32xf32> to vector<16x32xf32>
    %cst_29 = arith.constant dense<0.000000e+00> : vector<16x256xf32>
    %31 = tpu.matmul %30, %28, %cst_29 {dimension_numbers = #tpu.dot_dimension_numbers<[1], [0], [0], [1], [0, 0, 1, 1], [], []>} : vector<16x32xf32>, vector<32x256xf32>, vector<16x256xf32> -> vector<16x256xf32>
    %c0_30 = arith.constant 0 : index
    %c0_31 = arith.constant 0 : index
    %c0_32 = arith.constant 0 : index
    %32 = vector.load %arg5[%c0_30, %c0_31, %c0_32] : memref<3x256x256xf32, #tpu.memory_space<vmem>>, vector<1x256x256xf32>
    %33 = vector.shape_cast %32 : vector<1x256x256xf32> to vector<256x256xf32>
    %cst_33 = arith.constant dense<0.000000e+00> : vector<16x256xf32>
    %34 = tpu.matmul %31, %33, %cst_33 {dimension_numbers = #tpu.dot_dimension_numbers<[1], [0], [0], [1], [0, 0, 1, 1], [], []>} : vector<16x256xf32>, vector<256x256xf32>, vector<16x256xf32> -> vector<16x256xf32>
    %c1_34 = arith.constant 1 : index
    %c0_35 = arith.constant 0 : index
    %c0_36 = arith.constant 0 : index
    %35 = vector.load %arg4[%c1_34, %c0_35, %c0_36] : memref<3x16x32xf32, #tpu.memory_space<vmem>>, vector<1x16x32xf32>
    %36 = vector.shape_cast %35 : vector<1x16x32xf32> to vector<16x32xf32>
    %cst_37 = arith.constant dense<0.000000e+00> : vector<16x256xf32>
    %37 = tpu.matmul %36, %28, %cst_37 {dimension_numbers = #tpu.dot_dimension_numbers<[1], [0], [0], [1], [0, 0, 1, 1], [], []>} : vector<16x32xf32>, vector<32x256xf32>, vector<16x256xf32> -> vector<16x256xf32>
    %c1_38 = arith.constant 1 : index
    %c0_39 = arith.constant 0 : index
    %c0_40 = arith.constant 0 : index
    %38 = vector.load %arg5[%c1_38, %c0_39, %c0_40] : memref<3x256x256xf32, #tpu.memory_space<vmem>>, vector<1x256x256xf32>
    %39 = vector.shape_cast %38 : vector<1x256x256xf32> to vector<256x256xf32>
    %cst_41 = arith.constant dense<0.000000e+00> : vector<16x256xf32>
    %40 = tpu.matmul %37, %39, %cst_41 {dimension_numbers = #tpu.dot_dimension_numbers<[1], [0], [0], [1], [0, 0, 1, 1], [], []>} : vector<16x256xf32>, vector<256x256xf32>, vector<16x256xf32> -> vector<16x256xf32>
    %41 = arith.addf %34, %40 : vector<16x256xf32>
    %c2_42 = arith.constant 2 : index
    %c0_43 = arith.constant 0 : index
    %c0_44 = arith.constant 0 : index
    %42 = vector.load %arg4[%c2_42, %c0_43, %c0_44] : memref<3x16x32xf32, #tpu.memory_space<vmem>>, vector<1x16x32xf32>
    %43 = vector.shape_cast %42 : vector<1x16x32xf32> to vector<16x32xf32>
    %cst_45 = arith.constant dense<0.000000e+00> : vector<16x256xf32>
    %44 = tpu.matmul %43, %28, %cst_45 {dimension_numbers = #tpu.dot_dimension_numbers<[1], [0], [0], [1], [0, 0, 1, 1], [], []>} : vector<16x32xf32>, vector<32x256xf32>, vector<16x256xf32> -> vector<16x256xf32>
    %c2_46 = arith.constant 2 : index
    %c0_47 = arith.constant 0 : index
    %c0_48 = arith.constant 0 : index
    %45 = vector.load %arg5[%c2_46, %c0_47, %c0_48] : memref<3x256x256xf32, #tpu.memory_space<vmem>>, vector<1x256x256xf32>
    %46 = vector.shape_cast %45 : vector<1x256x256xf32> to vector<256x256xf32>
    %cst_49 = arith.constant dense<0.000000e+00> : vector<16x256xf32>
    %47 = tpu.matmul %44, %46, %cst_49 {dimension_numbers = #tpu.dot_dimension_numbers<[1], [0], [0], [1], [0, 0, 1, 1], [], []>} : vector<16x256xf32>, vector<256x256xf32>, vector<16x256xf32> -> vector<16x256xf32>
    %48 = arith.addf %41, %47 : vector<16x256xf32>
    %c0_50 = arith.constant 0 : index
    %c0_51 = arith.constant 0 : index
    %49 = vector.load %arg8[%c0_50, %c0_51] : memref<256x32xf32, #tpu.memory_space<vmem>>, vector<256x32xf32>
    %cst_52 = arith.constant dense<0.000000e+00> : vector<16x32xf32>
    %50 = tpu.matmul %48, %49, %cst_52 {dimension_numbers = #tpu.dot_dimension_numbers<[1], [0], [0], [1], [0, 0, 1, 1], [], []>} : vector<16x256xf32>, vector<256x32xf32>, vector<16x32xf32> -> vector<16x32xf32>
    %cst_53 = arith.constant dense<0.000000e+00> : vector<32xf32>
    %51 = vector.multi_reduction <add>, %50, %cst_53 [0] : vector<16x32xf32> to vector<32xf32>
    %52 = vector.shape_cast %51 : vector<32xf32> to vector<1x32xf32>
    %53 = arith.mulf %48, %48 : vector<16x256xf32>
    %c0_54 = arith.constant 0 : index
    %c0_55 = arith.constant 0 : index
    %54 = vector.load %arg8[%c0_54, %c0_55] : memref<256x32xf32, #tpu.memory_space<vmem>>, vector<256x32xf32>
    %cst_56 = arith.constant dense<0.000000e+00> : vector<16x32xf32>
    %55 = tpu.matmul %53, %54, %cst_56 {dimension_numbers = #tpu.dot_dimension_numbers<[1], [0], [0], [1], [0, 0, 1, 1], [], []>} : vector<16x256xf32>, vector<256x32xf32>, vector<16x32xf32> -> vector<16x32xf32>
    %cst_57 = arith.constant dense<0.000000e+00> : vector<32xf32>
    %56 = vector.multi_reduction <add>, %55, %cst_57 [0] : vector<16x32xf32> to vector<32xf32>
    %57 = vector.shape_cast %56 : vector<32xf32> to vector<1x32xf32>
    %cst_58 = arith.constant 7.812500e-03 : f32
    %58 = vector.broadcast %cst_58 : f32 to vector<1x32xf32>
    %59 = arith.mulf %52, %58 : vector<1x32xf32>
    %cst_59 = arith.constant 7.812500e-03 : f32
    %60 = vector.broadcast %cst_59 : f32 to vector<1x32xf32>
    %61 = arith.mulf %57, %60 : vector<1x32xf32>
    %62 = arith.mulf %59, %59 : vector<1x32xf32>
    %63 = arith.subf %61, %62 : vector<1x32xf32>
    %cst_60 = arith.constant 0.000000e+00 : f32
    %64 = vector.broadcast %cst_60 : f32 to vector<1x32xf32>
    %65 = arith.maximumf %63, %64 : vector<1x32xf32>
    %c0_61 = arith.constant 0 : index
    %c0_62 = arith.constant 0 : index
    %66 = vector.load %arg6[%c0_61, %c0_62] : memref<1x32xf32, #tpu.memory_space<vmem>>, vector<1x32xf32>
    %cst_63 = arith.constant 9.99999974E-6 : f32
    %67 = vector.broadcast %cst_63 : f32 to vector<1x32xf32>
    %68 = arith.addf %65, %67 : vector<1x32xf32>
    %69 = math.rsqrt %68 : vector<1x32xf32>
    %70 = arith.mulf %66, %69 : vector<1x32xf32>
    %c0_64 = arith.constant 0 : index
    %c0_65 = arith.constant 0 : index
    %71 = vector.load %arg7[%c0_64, %c0_65] : memref<1x32xf32, #tpu.memory_space<vmem>>, vector<1x32xf32>
    %72 = arith.mulf %59, %70 : vector<1x32xf32>
    %73 = arith.subf %71, %72 : vector<1x32xf32>
    %c0_66 = arith.constant 0 : index
    %c0_67 = arith.constant 0 : index
    %74 = vector.load %arg9[%c0_66, %c0_67] : memref<32x256xf32, #tpu.memory_space<vmem>>, vector<32x256xf32>
    %cst_68 = arith.constant dense<0.000000e+00> : vector<1x256xf32>
    %75 = tpu.matmul %70, %74, %cst_68 {dimension_numbers = #tpu.dot_dimension_numbers<[1], [0], [0], [1], [0, 0, 1, 1], [], []>} : vector<1x32xf32>, vector<32x256xf32>, vector<1x256xf32> -> vector<1x256xf32>
    %c0_69 = arith.constant 0 : index
    %c0_70 = arith.constant 0 : index
    %76 = vector.load %arg9[%c0_69, %c0_70] : memref<32x256xf32, #tpu.memory_space<vmem>>, vector<32x256xf32>
    %cst_71 = arith.constant dense<0.000000e+00> : vector<1x256xf32>
    %77 = tpu.matmul %73, %76, %cst_71 {dimension_numbers = #tpu.dot_dimension_numbers<[1], [0], [0], [1], [0, 0, 1, 1], [], []>} : vector<1x32xf32>, vector<32x256xf32>, vector<1x256xf32> -> vector<1x256xf32>
    %78 = vector.broadcast %75 : vector<1x256xf32> to vector<16x256xf32>
    %79 = arith.mulf %48, %78 : vector<16x256xf32>
    %80 = vector.broadcast %77 : vector<1x256xf32> to vector<16x256xf32>
    %81 = arith.addf %79, %80 : vector<16x256xf32>
    %cst_72 = arith.constant 0.000000e+00 : f32
    %82 = vector.broadcast %cst_72 : f32 to vector<16x256xf32>
    %83 = arith.cmpf ogt, %81, %82 : vector<16x256xf32>
    %cst_73 = arith.constant 2.000000e-01 : f32
    %84 = vector.broadcast %cst_73 : f32 to vector<16x256xf32>
    %85 = arith.mulf %84, %81 : vector<16x256xf32>
    %86 = arith.select %83, %81, %85 : vector<16x256xi1>, vector<16x256xf32>
    %c0_74 = arith.constant 0 : index
    %c0_75 = arith.constant 0 : index
    %c0_76 = arith.constant 0 : index
    %87 = vector.load %arg10[%c0_74, %c0_75, %c0_76] : memref<3x8x16xf32, #tpu.memory_space<vmem>>, vector<1x8x16xf32>
    %88 = vector.shape_cast %87 : vector<1x8x16xf32> to vector<8x16xf32>
    %cst_77 = arith.constant dense<0.000000e+00> : vector<8x256xf32>
    %89 = tpu.matmul %88, %86, %cst_77 {dimension_numbers = #tpu.dot_dimension_numbers<[1], [0], [0], [1], [0, 0, 1, 1], [], []>} : vector<8x16xf32>, vector<16x256xf32>, vector<8x256xf32> -> vector<8x256xf32>
    %c0_78 = arith.constant 0 : index
    %c0_79 = arith.constant 0 : index
    %c0_80 = arith.constant 0 : index
    %90 = vector.load %arg11[%c0_78, %c0_79, %c0_80] : memref<3x256x128xf32, #tpu.memory_space<vmem>>, vector<1x256x128xf32>
    %91 = vector.shape_cast %90 : vector<1x256x128xf32> to vector<256x128xf32>
    %cst_81 = arith.constant dense<0.000000e+00> : vector<8x128xf32>
    %92 = tpu.matmul %89, %91, %cst_81 {dimension_numbers = #tpu.dot_dimension_numbers<[1], [0], [0], [1], [0, 0, 1, 1], [], []>} : vector<8x256xf32>, vector<256x128xf32>, vector<8x128xf32> -> vector<8x128xf32>
    %c1_82 = arith.constant 1 : index
    %c0_83 = arith.constant 0 : index
    %c0_84 = arith.constant 0 : index
    %93 = vector.load %arg10[%c1_82, %c0_83, %c0_84] : memref<3x8x16xf32, #tpu.memory_space<vmem>>, vector<1x8x16xf32>
    %94 = vector.shape_cast %93 : vector<1x8x16xf32> to vector<8x16xf32>
    %cst_85 = arith.constant dense<0.000000e+00> : vector<8x256xf32>
    %95 = tpu.matmul %94, %86, %cst_85 {dimension_numbers = #tpu.dot_dimension_numbers<[1], [0], [0], [1], [0, 0, 1, 1], [], []>} : vector<8x16xf32>, vector<16x256xf32>, vector<8x256xf32> -> vector<8x256xf32>
    %c1_86 = arith.constant 1 : index
    %c0_87 = arith.constant 0 : index
    %c0_88 = arith.constant 0 : index
    %96 = vector.load %arg11[%c1_86, %c0_87, %c0_88] : memref<3x256x128xf32, #tpu.memory_space<vmem>>, vector<1x256x128xf32>
    %97 = vector.shape_cast %96 : vector<1x256x128xf32> to vector<256x128xf32>
    %cst_89 = arith.constant dense<0.000000e+00> : vector<8x128xf32>
    %98 = tpu.matmul %95, %97, %cst_89 {dimension_numbers = #tpu.dot_dimension_numbers<[1], [0], [0], [1], [0, 0, 1, 1], [], []>} : vector<8x256xf32>, vector<256x128xf32>, vector<8x128xf32> -> vector<8x128xf32>
    %99 = arith.addf %92, %98 : vector<8x128xf32>
    %c2_90 = arith.constant 2 : index
    %c0_91 = arith.constant 0 : index
    %c0_92 = arith.constant 0 : index
    %100 = vector.load %arg10[%c2_90, %c0_91, %c0_92] : memref<3x8x16xf32, #tpu.memory_space<vmem>>, vector<1x8x16xf32>
    %101 = vector.shape_cast %100 : vector<1x8x16xf32> to vector<8x16xf32>
    %cst_93 = arith.constant dense<0.000000e+00> : vector<8x256xf32>
    %102 = tpu.matmul %101, %86, %cst_93 {dimension_numbers = #tpu.dot_dimension_numbers<[1], [0], [0], [1], [0, 0, 1, 1], [], []>} : vector<8x16xf32>, vector<16x256xf32>, vector<8x256xf32> -> vector<8x256xf32>
    %c2_94 = arith.constant 2 : index
    %c0_95 = arith.constant 0 : index
    %c0_96 = arith.constant 0 : index
    %103 = vector.load %arg11[%c2_94, %c0_95, %c0_96] : memref<3x256x128xf32, #tpu.memory_space<vmem>>, vector<1x256x128xf32>
    %104 = vector.shape_cast %103 : vector<1x256x128xf32> to vector<256x128xf32>
    %cst_97 = arith.constant dense<0.000000e+00> : vector<8x128xf32>
    %105 = tpu.matmul %102, %104, %cst_97 {dimension_numbers = #tpu.dot_dimension_numbers<[1], [0], [0], [1], [0, 0, 1, 1], [], []>} : vector<8x256xf32>, vector<256x128xf32>, vector<8x128xf32> -> vector<8x128xf32>
    %106 = arith.addf %99, %105 : vector<8x128xf32>
    %c0_98 = arith.constant 0 : index
    %c0_99 = arith.constant 0 : index
    %107 = vector.load %arg14[%c0_98, %c0_99] : memref<128x32xf32, #tpu.memory_space<vmem>>, vector<128x32xf32>
    %cst_100 = arith.constant dense<0.000000e+00> : vector<8x32xf32>
    %108 = tpu.matmul %106, %107, %cst_100 {dimension_numbers = #tpu.dot_dimension_numbers<[1], [0], [0], [1], [0, 0, 1, 1], [], []>} : vector<8x128xf32>, vector<128x32xf32>, vector<8x32xf32> -> vector<8x32xf32>
    %cst_101 = arith.constant dense<0.000000e+00> : vector<32xf32>
    %109 = vector.multi_reduction <add>, %108, %cst_101 [0] : vector<8x32xf32> to vector<32xf32>
    %110 = vector.shape_cast %109 : vector<32xf32> to vector<1x32xf32>
    %111 = arith.mulf %106, %106 : vector<8x128xf32>
    %c0_102 = arith.constant 0 : index
    %c0_103 = arith.constant 0 : index
    %112 = vector.load %arg14[%c0_102, %c0_103] : memref<128x32xf32, #tpu.memory_space<vmem>>, vector<128x32xf32>
    %cst_104 = arith.constant dense<0.000000e+00> : vector<8x32xf32>
    %113 = tpu.matmul %111, %112, %cst_104 {dimension_numbers = #tpu.dot_dimension_numbers<[1], [0], [0], [1], [0, 0, 1, 1], [], []>} : vector<8x128xf32>, vector<128x32xf32>, vector<8x32xf32> -> vector<8x32xf32>
    %cst_105 = arith.constant dense<0.000000e+00> : vector<32xf32>
    %114 = vector.multi_reduction <add>, %113, %cst_105 [0] : vector<8x32xf32> to vector<32xf32>
    %115 = vector.shape_cast %114 : vector<32xf32> to vector<1x32xf32>
    %cst_106 = arith.constant 3.125000e-02 : f32
    %116 = vector.broadcast %cst_106 : f32 to vector<1x32xf32>
    %117 = arith.mulf %110, %116 : vector<1x32xf32>
    %cst_107 = arith.constant 3.125000e-02 : f32
    %118 = vector.broadcast %cst_107 : f32 to vector<1x32xf32>
    %119 = arith.mulf %115, %118 : vector<1x32xf32>
    %120 = arith.mulf %117, %117 : vector<1x32xf32>
    %121 = arith.subf %119, %120 : vector<1x32xf32>
    %cst_108 = arith.constant 0.000000e+00 : f32
    %122 = vector.broadcast %cst_108 : f32 to vector<1x32xf32>
    %123 = arith.maximumf %121, %122 : vector<1x32xf32>
    %c0_109 = arith.constant 0 : index
    %c0_110 = arith.constant 0 : index
    %124 = vector.load %arg12[%c0_109, %c0_110] : memref<1x32xf32, #tpu.memory_space<vmem>>, vector<1x32xf32>
    %cst_111 = arith.constant 9.99999974E-6 : f32
    %125 = vector.broadcast %cst_111 : f32 to vector<1x32xf32>
    %126 = arith.addf %123, %125 : vector<1x32xf32>
    %127 = math.rsqrt %126 : vector<1x32xf32>
    %128 = arith.mulf %124, %127 : vector<1x32xf32>
    %c0_112 = arith.constant 0 : index
    %c0_113 = arith.constant 0 : index
    %129 = vector.load %arg13[%c0_112, %c0_113] : memref<1x32xf32, #tpu.memory_space<vmem>>, vector<1x32xf32>
    %130 = arith.mulf %117, %128 : vector<1x32xf32>
    %131 = arith.subf %129, %130 : vector<1x32xf32>
    %c0_114 = arith.constant 0 : index
    %c0_115 = arith.constant 0 : index
    %132 = vector.load %arg15[%c0_114, %c0_115] : memref<32x128xf32, #tpu.memory_space<vmem>>, vector<32x128xf32>
    %cst_116 = arith.constant dense<0.000000e+00> : vector<1x128xf32>
    %133 = tpu.matmul %128, %132, %cst_116 {dimension_numbers = #tpu.dot_dimension_numbers<[1], [0], [0], [1], [0, 0, 1, 1], [], []>} : vector<1x32xf32>, vector<32x128xf32>, vector<1x128xf32> -> vector<1x128xf32>
    %c0_117 = arith.constant 0 : index
    %c0_118 = arith.constant 0 : index
    %134 = vector.load %arg15[%c0_117, %c0_118] : memref<32x128xf32, #tpu.memory_space<vmem>>, vector<32x128xf32>
    %cst_119 = arith.constant dense<0.000000e+00> : vector<1x128xf32>
    %135 = tpu.matmul %131, %134, %cst_119 {dimension_numbers = #tpu.dot_dimension_numbers<[1], [0], [0], [1], [0, 0, 1, 1], [], []>} : vector<1x32xf32>, vector<32x128xf32>, vector<1x128xf32> -> vector<1x128xf32>
    %136 = vector.broadcast %133 : vector<1x128xf32> to vector<8x128xf32>
    %137 = arith.mulf %106, %136 : vector<8x128xf32>
    %138 = vector.broadcast %135 : vector<1x128xf32> to vector<8x128xf32>
    %139 = arith.addf %137, %138 : vector<8x128xf32>
    %cst_120 = arith.constant 0.000000e+00 : f32
    %140 = vector.broadcast %cst_120 : f32 to vector<8x128xf32>
    %141 = arith.cmpf ogt, %139, %140 : vector<8x128xf32>
    %cst_121 = arith.constant 2.000000e-01 : f32
    %142 = vector.broadcast %cst_121 : f32 to vector<8x128xf32>
    %143 = arith.mulf %142, %139 : vector<8x128xf32>
    %144 = arith.select %141, %139, %143 : vector<8x128xi1>, vector<8x128xf32>
    %c0_122 = arith.constant 0 : index
    %c0_123 = arith.constant 0 : index
    %145 = vector.load %arg16[%c0_122, %c0_123] : memref<4x128xf32, #tpu.memory_space<vmem>>, vector<4x128xf32>
    %146 = vector.extract_strided_slice %144 {offsets = [0, 0], sizes = [4, 128], strides = [1, 1]} : vector<8x128xf32> to vector<4x128xf32>
    %147 = arith.mulf %146, %145 : vector<4x128xf32>
    %cst_124 = arith.constant dense<0.000000e+00> : vector<4xf32>
    %148 = vector.multi_reduction <add>, %147, %cst_124 [1] : vector<4x128xf32> to vector<4xf32>
    %149 = vector.shape_cast %148 : vector<4xf32> to vector<4x1xf32>
    %cst_125 = arith.constant dense<0.000000e+00> : vector<1xf32>
    %150 = vector.multi_reduction <add>, %149, %cst_125 [0] : vector<4x1xf32> to vector<1xf32>
    %151 = vector.shape_cast %150 : vector<1xf32> to vector<1x1xf32>
    %152 = vector.extract_strided_slice %144 {offsets = [4, 0], sizes = [4, 128], strides = [1, 1]} : vector<8x128xf32> to vector<4x128xf32>
    %153 = arith.mulf %152, %145 : vector<4x128xf32>
    %cst_126 = arith.constant dense<0.000000e+00> : vector<4xf32>
    %154 = vector.multi_reduction <add>, %153, %cst_126 [1] : vector<4x128xf32> to vector<4xf32>
    %155 = vector.shape_cast %154 : vector<4xf32> to vector<4x1xf32>
    %cst_127 = arith.constant dense<0.000000e+00> : vector<1xf32>
    %156 = vector.multi_reduction <add>, %155, %cst_127 [0] : vector<4x1xf32> to vector<1xf32>
    %157 = vector.shape_cast %156 : vector<1xf32> to vector<1x1xf32>
    %158 = tpu.concatenate %151, %157 in 0 : vector<1x1xf32>, vector<1x1xf32> -> vector<2x1xf32>
    %c0_128 = arith.constant 0 : index
    %c0_129 = arith.constant 0 : index
    %159 = vector.load %arg17[%c0_128, %c0_129] : memref<1x1xf32, #tpu.memory_space<vmem>>, vector<1x1xf32>
    %160 = vector.broadcast %159 : vector<1x1xf32> to vector<2x1xf32>
    %161 = arith.addf %158, %160 : vector<2x1xf32>
    %cst_130 = arith.constant 0.000000e+00 : f32
    %162 = vector.broadcast %cst_130 : f32 to vector<2x1xf32>
    %163 = arith.subf %162, %161 : vector<2x1xf32>
    %164 = math.exp %163 : vector<2x1xf32>
    %cst_131 = arith.constant 1.000000e+00 : f32
    %165 = vector.broadcast %cst_131 : f32 to vector<2x1xf32>
    %166 = arith.addf %165, %164 : vector<2x1xf32>
    %cst_132 = arith.constant 1.000000e+00 : f32
    %167 = vector.broadcast %cst_132 : f32 to vector<2x1xf32>
    %168 = arith.divf %167, %166 : vector<2x1xf32>
    %c0_133 = arith.constant 0 : index
    %c0_134 = arith.constant 0 : index
    %169 = vector.load %arg18[%c0_133, %c0_134] : memref<2x1xf32, #tpu.memory_space<vmem>>, vector<2x1xf32>
    tpu.vector_store %arg18[%c0_133, %c0_134], %168 {strides = array<i32>} : memref<2x1xf32, #tpu.memory_space<vmem>>, vector<2x1xf32>,
    return
  }
}

</mosaic_0001>

<bundles_post_ra>
// kernel: gan_v1_forward.1
= control target key start
LH: loop header
LB: loop body
LE: loop exit
PB: predicated region body
PF: predicated region fallthrough
CT: control target
= control target key end

     0   :  { %s3156_s0 = inlined_call_operand.vmem [shape: f32[64,96], index: 0, kind: input, shape index: {}]   ;;  %s3157_s1 = inlined_call_operand.vmem [shape: f32[3,32,64], index: 1, kind: input, shape index: {}]   ;;  %s3158_s2 = inlined_call_operand.hbm [shape: f32[3,96,256], index: 2, kind: input, shape index: {}]   ;;  %s3159_s3 = inlined_call_operand.vmem [shape: f32[1,256], index: 3, kind: input, shape index: {}]   ;;  %s3160_s4 = inlined_call_operand.vmem [shape: f32[3,16,32], index: 4, kind: input, shape index: {}]   ;;  %s3161_s5 = inlined_call_operand.hbm [shape: f32[3,256,256], index: 5, kind: input, shape index: {}]   ;;  %s3162_s6 = inlined_call_operand.vmem [shape: f32[1,32], index: 6, kind: input, shape index: {}]   ;;  %s3163_s7 = inlined_call_operand.vmem [shape: f32[1,32], index: 7, kind: input, shape index: {}]   ;;  %s3164_s8 = inlined_call_operand.vmem [shape: f32[256,32], index: 8, kind: input, shape index: {}]   ;;  %s3165_s9 = inlined_call_operand.vmem [shape: f32[32,256], index: 9, kind: input, shape index: {}]   ;;  %s3166_s10 = inlined_call_operand.vmem [shape: f32[3,8,16], index: 10, kind: input, shape index: {}]   ;;  %s3167_s11 = inlined_call_operand.vmem [shape: f32[3,256,128], index: 11, kind: input, shape index: {}]   ;;  %s3168_s12 = inlined_call_operand.vmem [shape: f32[1,32], index: 12, kind: input, shape index: {}]   ;;  %s3169_s13 = inlined_call_operand.vmem [shape: f32[1,32], index: 13, kind: input, shape index: {}]   ;;  %s3170_s14 = inlined_call_operand.vmem [shape: f32[128,32], index: 14, kind: input, shape index: {}]   ;;  %s3171_s15 = inlined_call_operand.vmem [shape: f32[32,128], index: 15, kind: input, shape index: {}]   ;;  %s3172_s16 = inlined_call_operand.vmem [shape: f32[4,128], index: 16, kind: input, shape index: {}]   ;;  %s3173_s17 = inlined_call_operand.<no memory space> [shape: f32[1,1], index: 17, kind: input, shape index: {}]   ;;  %s3174_s18 = inlined_call_operand.vmem [shape: f32[2,1], index: 18, kind: output, shape index: {}]  }
   0x1   :  { %3177 = sst [smem:[#allocation9_spill]] %s3156_s0  ;;  %v23_v0 = vstv %s3173_s17 }
   0x2   :  { %3178 = sst [smem:[#allocation10_spill]] %s3157_s1  ;;  %24 = vst [vmem:[#allocation2] sm:$0x1] %v23_v0 }
   0x3   :  { %3179 = sst [smem:[#allocation11_spill]] %s3158_s2 }
   0x4   :  { %25 = vsyncpa [#allocation4], 0  ;;  %s3180_s0 = sld [smem:[#allocation11_spill]] }
   0xa   :  { %s35_s19 = sshll.u32 %s3180_s0, 4  ;;  %s36_s19 = int_to_ptr.hbm [resolvable:$true] %s35_s19 }
   0xb   :  { %26 = vsyncpa [#allocation6], 0  ;;  %s2265_s1 = smov [#allocation3]   ;;  %s52_s2 = sshll.u32 %s3161_s5, 4  ;;  %s53_s2 = int_to_ptr.hbm [resolvable:$true] %s52_s2 }
   0xc   :  { %s37_s20 = sshll.u32 %s2265_s1, 4  ;;  %s2266_s23 = smov 256   ;;  %s38_s20 = int_to_ptr.vmem [resolvable:$true] %s37_s20 }
   0xd   :  { %s2267_s24 = smov 16   ;;  %s2268_s17 = smov [#allocation5]  }
   0xe   :  { %43 = dma.hbm_to_vmem [thread:$0]  %s36_s19, 9216, %s38_s20, [#allocation4], %s2266_s23, %s2266_s23, %s2267_s24  }
   0xf   :  { %s54_s25 = sshll.u32 %s2268_s17, 4  ;;  %s55_s25 = int_to_ptr.vmem [resolvable:$true] %s54_s25 }
  0x10   :  { %60 = dma.hbm_to_vmem [thread:$0]  %s53_s2, 24576, %s55_s25, [#allocation6], %s2266_s23, %s2266_s23, %s2267_s24  }
  0x11   :  { %2261 = dma.done.wait [#allocation4], 9216  }
  0x12   :  { %2262 = vsyncadd [#allocation4], 4294958080 }
  0x13   :  { %2263 = dma.done.wait [#allocation6], 24576  }
  0x14   :  { %2264 = vsyncadd [#allocation6], 4294942720  ;;  %s3181_s28 = sld [smem:[#allocation9_spill]]  ;;  %v240_v7 = vld [vmem:[#allocation3 + $0x170] sm:$0xff]  ;;  %v241_v8 = vld [vmem:[#allocation3 + $0x178] sm:$0xff]  ;;  %vm105_vm0 = vcmask 523264  }
  0x15   :  { %v238_v9 = vld [vmem:[#allocation3 + $0x160] sm:$0xff]  ;;  %v239_v10 = vld [vmem:[#allocation3 + $0x168] sm:$0xff]  ;;  %259 = vmatpush.msra.mxu2 %v240_v7  ;;  %288 = vmatpush.msra.mxu3 %v241_v8  ;;  %v236_v12 = vld [vmem:[#allocation3 + $0x150] sm:$0xff]  ;;  %s3182_s29 = sld [smem:[#allocation10_spill]]  ;;  %vm242_vm1 = vcmask 785408   ;;  %vm572_vm9 = vcmask 261120  }
  0x16   :  { %v237_v13 = vld [vmem:[#allocation3 + $0x158] sm:$0xff]  ;;  %v234_v17 = vld [vmem:[#allocation3 + $0x140] sm:$0xff]  ;;  %v235_v18 = vld [vmem:[#allocation3 + $0x148] sm:$0xff] }
  0x17   :  { %260 = vmatpush.msra.mxu2 %v238_v9  ;;  %289 = vmatpush.msra.mxu3 %v239_v10  ;;  %v169_v19 = vld [vmem:[#allocation3 + $0xb0] sm:$0xff]  ;;  %v170_v20 = vld [vmem:[#allocation3 + $0xb8] sm:$0xff]  ;;  %v167_v23 = vld [vmem:[#allocation3 + $0xa0] sm:$0xff] }
  0x18   :  { %v232_v21 = vld [vmem:[#allocation3 + $0x130] sm:$0xff]  ;;  %v233_v22 = vld [vmem:[#allocation3 + $0x138] sm:$0xff]  ;;  %v168_v24 = vld [vmem:[#allocation3 + $0xa8] sm:$0xff] }
  0x19   :  { %261 = vmatpush.msra.mxu2 %v236_v12  ;;  %290 = vmatpush.msra.mxu3 %v237_v13  ;;  %v230_v25 = vld [vmem:[#allocation3 + $0x120] sm:$0xff]  ;;  %v231_v26 = vld [vmem:[#allocation3 + $0x128] sm:$0xff]  ;;  %v165_v27 = vld [vmem:[#allocation3 + $0x90] sm:$0xff] }
  0x1a   :  { %v2376_v1 = vld [vmem:[%s3181_s28 + $0x38] sm:$0xff]  ;;  %v2381_v2 = vld [vmem:[%s3181_s28 + $0x30] sm:$0xff]  ;;  %v2388_v3 = vld [vmem:[%s3181_s28 + $0x28] sm:$0xff] }
  0x1b   :  { %196 = vmatpush.msra.mxu1 %v2376_v1  ;;  %126 = vmatpush.msra.mxu0 %v2376_v1  ;;  %v2395_v4 = vld [vmem:[%s3181_s28 + $0x20] sm:$0xff]  ;;  %v2402_v5 = vld [vmem:[%s3181_s28 + $0x18] sm:$0xff]  ;;  %v2409_v6 = vld [vmem:[%s3181_s28 + $0x10] sm:$0xff] }
  0x1c   :  { %v2416_v11 = vld [vmem:[%s3181_s28 + $0x8] sm:$0xff]  ;;  %v2423_v14 = vld [vmem:[%s3181_s28] sm:$0xff]  ;;  %262 = vmatpush.msra.mxu2 %v234_v17  ;;  %291 = vmatpush.msra.mxu3 %v235_v18  ;;  %v228_v29 = vld [vmem:[#allocation3 + $0x110] sm:$0xff] }
  0x1d   :  { %197 = vmatpush.msra.mxu1 %v2381_v2  ;;  %127 = vmatpush.msra.mxu0 %v2381_v2  ;;  %v2066_v15 = vld [vmem:[%s3182_s29 + $0x20] sm:$0xff]  ;;  %v2067_v31 = vld [vmem:[%s3182_s29 + $0x28] sm:$0xff]  ;;  %v161_v37 = vld [vmem:[#allocation3 + $0x70] sm:$0xff] }
  0x1e   :  { %v101_v16 = vld [vmem:[%s3182_s29] sm:$0xff]  ;;  %263 = vmatpush.msra.mxu2 %v232_v21  ;;  %292 = vmatpush.msra.mxu3 %v233_v22  ;;  %v102_v32 = vld [vmem:[%s3182_s29 + $0x8] sm:$0xff]  ;;  %v224_v39 = vld [vmem:[#allocation3 + $0xf0] sm:$0xff] }
  0x1f   :  { %198 = vmatpush.msra.mxu1 %v2388_v3  ;;  %128 = vmatpush.msra.mxu0 %v2388_v3  ;;  %v166_v28 = vld [vmem:[#allocation3 + $0x98] sm:$0xff]  ;;  %v163_v33 = vld [vmem:[#allocation3 + $0x80] sm:$0xff]  ;;  %v164_v34 = vld [vmem:[#allocation3 + $0x88] sm:$0xff] }
  0x20   :  { %v229_v30 = vld [vmem:[#allocation3 + $0x118] sm:$0xff]  ;;  %264 = vmatpush.msra.mxu2 %v230_v25  ;;  %293 = vmatpush.msra.mxu3 %v231_v26  ;;  %v226_v35 = vld [vmem:[#allocation3 + $0x100] sm:$0xff]  ;;  %v227_v36 = vld [vmem:[#allocation3 + $0x108] sm:$0xff] }
  0x21   :  { %199 = vmatpush.msra.mxu1 %v2395_v4  ;;  %129 = vmatpush.msra.mxu0 %v2395_v4  ;;  %v162_v38 = vld [vmem:[#allocation3 + $0x78] sm:$0xff]  ;;  %v159_v41 = vld [vmem:[#allocation3 + $0x60] sm:$0xff]  ;;  %v160_v42 = vld [vmem:[#allocation3 + $0x68] sm:$0xff] }
  0x22   :  { %265 = vmatpush.msra.mxu2 %v228_v29  ;;  %294 = vmatpush.msra.mxu3 %v229_v30  ;;  %v225_v40 = vld [vmem:[#allocation3 + $0xf8] sm:$0xff]  ;;  %v222_v43 = vld [vmem:[#allocation3 + $0xe0] sm:$0xff]  ;;  %v223_v44 = vld [vmem:[#allocation3 + $0xe8] sm:$0xff] }
  0x23   :  { %200 = vmatpush.msra.mxu1 %v2402_v5  ;;  %130 = vmatpush.msra.mxu0 %v2402_v5  ;;  %v157_v45 = vld [vmem:[#allocation3 + $0x50] sm:$0xff]  ;;  %v158_v46 = vld [vmem:[#allocation3 + $0x58] sm:$0xff]  ;;  %v155_v51 = vld [vmem:[#allocation3 + $0x40] sm:$0xff] }
  0x24   :  { %266 = vmatpush.msra.mxu2 %v226_v35  ;;  %295 = vmatpush.msra.mxu3 %v227_v36  ;;  %v2068_v47 = vld [vmem:[%s3182_s29 + $0x30] sm:$0xff]  ;;  %v221_v50 = vld [vmem:[#allocation3 + $0xd8] sm:$0xff]  ;;  %v218_v55 = vld [vmem:[#allocation3 + $0xc0] sm:$0xff] }
  0x25   :  { %201 = vmatpush.msra.mxu1 %v2409_v6  ;;  %131 = vmatpush.msra.mxu0 %v2409_v6  ;;  %v103_v48 = vld [vmem:[%s3182_s29 + $0x10] sm:$0xff]  ;;  %v2069_v53 = vld [vmem:[%s3182_s29 + $0x38] sm:$0xff]  ;;  %v151_v59 = vld [vmem:[#allocation3 + $0x20] sm:$0xff] }
  0x26   :  { %267 = vmatpush.msra.mxu2 %v224_v39  ;;  %296 = vmatpush.msra.mxu3 %v225_v40  ;;  %v220_v49 = vld [vmem:[#allocation3 + $0xd0] sm:$0xff]  ;;  %v156_v52 = vld [vmem:[#allocation3 + $0x48] sm:$0xff]  ;;  %v154_v58 = vld [vmem:[#allocation3 + $0x38] sm:$0xff] }
  0x27   :  { %202 = vmatpush.msra.mxu1 %v2416_v11  ;;  %132 = vmatpush.msra.mxu0 %v2416_v11  ;;  %v104_v54 = vld [vmem:[%s3182_s29 + $0x18] sm:$0xff]  ;;  %v219_v56 = vld [vmem:[#allocation3 + $0xc8] sm:$0xff]  ;;  %v147_v63 = vld [vmem:[#allocation3] sm:$0xff] }
  0x28   :  { %268 = vmatpush.msra.mxu2 %v222_v43  ;;  %297 = vmatpush.msra.mxu3 %v223_v44  ;;  %v153_v57 = vld [vmem:[#allocation3 + $0x30] sm:$0xff]  ;;  %v152_v60 = vld [vmem:[#allocation3 + $0x28] sm:$0xff]  ;;  %v150_v62 = vld [vmem:[#allocation3 + $0x18] sm:$0xff] }
  0x29   :  { %203 = vmatpush.msra.mxu1 %v2423_v14  ;;  %133 = vmatpush.msra.mxu0 %v2423_v14  ;;  %v149_v61 = vld [vmem:[#allocation3 + $0x10] sm:$0xff]  ;;  %v148_v0 = vld [vmem:[#allocation3 + $0x8] sm:$0xff]  ;;  %v2090_v9 = vld [vmem:[%s3182_s29 + $0x40] sm:$0xff] }
  0x2a   :  { %2070 = vmatmul.msk.f32.vlgmr.msra.gmra.mxu1 %vm105_vm0, %v2066_v15  ;;  %2062 = vmatmul.msk.f32.vlgmr.msra.gmra.mxu0 %vm105_vm0, %v101_v16  ;;  %v2091_v10 = vld [vmem:[%s3182_s29 + $0x48] sm:$0xff]  ;;  %v2093_v12 = vld [vmem:[%s3182_s29 + $0x58] sm:$0xff] }
  0x2b   :  { %329 = vmatpush.msrb.mxu0 %v169_v19  ;;  %358 = vmatpush.msrb.mxu1 %v170_v20  ;;  %v452_v13 = vld [vmem:[#allocation3 + $0x230] sm:$0xff]  ;;  %v450_v15 = vld [vmem:[#allocation3 + $0x220] sm:$0xff]  ;;  %v451_v16 = vld [vmem:[#allocation3 + $0x228] sm:$0xff] }
  0x2c   :  { %269 = vmatpush.msra.mxu2 %v220_v49  ;;  %298 = vmatpush.msra.mxu3 %v221_v50  ;;  %v448_v17 = vld [vmem:[#allocation3 + $0x210] sm:$0xff]  ;;  %v449_v18 = vld [vmem:[#allocation3 + $0x218] sm:$0xff]  ;;  %v446_v19 = vld [vmem:[#allocation3 + $0x200] sm:$0xff] }
  0x2d   :  { %330 = vmatpush.msrb.mxu0 %v167_v23  ;;  %359 = vmatpush.msrb.mxu1 %v168_v24  ;;  %v447_v20 = vld [vmem:[#allocation3 + $0x208] sm:$0xff]  ;;  %v444_v21 = vld [vmem:[#allocation3 + $0x1f0] sm:$0xff]  ;;  %v445_v22 = vld [vmem:[#allocation3 + $0x1f8] sm:$0xff] }
  0x2e   :  { %270 = vmatpush.msra.mxu2 %v218_v55  ;;  %299 = vmatpush.msra.mxu3 %v219_v56  ;;  %v442_v23 = vld [vmem:[#allocation3 + $0x1e0] sm:$0xff]  ;;  %v443_v24 = vld [vmem:[#allocation3 + $0x1e8] sm:$0xff]  ;;  %v440_v25 = vld [vmem:[#allocation3 + $0x1d0] sm:$0xff] }
  0x2f   :  { %331 = vmatpush.msrb.mxu0 %v165_v27  ;;  %360 = vmatpush.msrb.mxu1 %v166_v28  ;;  %v441_v26 = vld [vmem:[#allocation3 + $0x1d8] sm:$0xff]  ;;  %v438_v27 = vld [vmem:[#allocation3 + $0x1c0] sm:$0xff]  ;;  %v439_v28 = vld [vmem:[#allocation3 + $0x1c8] sm:$0xff] }
  0x30   :  { %408 = vmatpush.msrb.mxu2 %v2376_v1  ;;  %470 = vmatpush.msrb.mxu3 %v452_v13  ;;  %v436_v29 = vld [vmem:[#allocation3 + $0x1b0] sm:$0xff]  ;;  %v437_v30 = vld [vmem:[#allocation3 + $0x1b8] sm:$0xff]  ;;  %v430_v36 = vld [vmem:[#allocation3 + $0x180] sm:$0xff] }
  0x31   :  { %332 = vmatpush.msrb.mxu0 %v163_v33  ;;  %361 = vmatpush.msrb.mxu1 %v164_v34  ;;  %v432_v33 = vld [vmem:[#allocation3 + $0x190] sm:$0xff]  ;;  %v433_v34 = vld [vmem:[#allocation3 + $0x198] sm:$0xff] }
  0x32   :  { %2071 = vmatmul.msk.f32.gmra.mxu1 %vm105_vm0, %v2067_v31  ;;  %2063 = vmatmul.msk.f32.gmra.mxu0 %vm105_vm0, %v102_v32  ;;  %v434_v31 = vld [vmem:[#allocation3 + $0x1a0] sm:$0xff]  ;;  %v435_v32 = vld [vmem:[#allocation3 + $0x1a8] sm:$0xff] }
  0x33   :  { %333 = vmatpush.msrb.mxu0 %v161_v37  ;;  %362 = vmatpush.msrb.mxu1 %v162_v38  ;;  %v431_v37 = vld [vmem:[#allocation3 + $0x188] sm:$0xff] }
  0x34   :  { %409 = vmatpush.msrb.mxu2 %v2381_v2  ;;  %471 = vmatpush.msrb.mxu3 %v450_v15 }
  0x35   :  { %334 = vmatpush.msrb.mxu0 %v159_v41  ;;  %363 = vmatpush.msrb.mxu1 %v160_v42 }
  0x36   :  { %410 = vmatpush.msrb.mxu2 %v2388_v3  ;;  %472 = vmatpush.msrb.mxu3 %v448_v17 }
  0x37   :  { %335 = vmatpush.msrb.mxu0 %v157_v45  ;;  %364 = vmatpush.msrb.mxu1 %v158_v46 }
  0x38   :  { %411 = vmatpush.msrb.mxu2 %v2395_v4  ;;  %473 = vmatpush.msrb.mxu3 %v446_v19 }
  0x39   :  { %336 = vmatpush.msrb.mxu0 %v155_v51  ;;  %365 = vmatpush.msrb.mxu1 %v156_v52 }
  0x3a   :  { %2072 = vmatmul.msk.f32.gmra.mxu1 %vm105_vm0, %v2068_v47  ;;  %2064 = vmatmul.msk.f32.gmra.mxu0 %vm105_vm0, %v103_v48 }
  0x3b   :  { %337 = vmatpush.msrb.mxu0 %v153_v57  ;;  %366 = vmatpush.msrb.mxu1 %v154_v58 }
  0x3c   :  { %412 = vmatpush.msrb.mxu2 %v2402_v5  ;;  %474 = vmatpush.msrb.mxu3 %v444_v21 }
  0x3d   :  { %338 = vmatpush.msrb.mxu0 %v151_v59  ;;  %367 = vmatpush.msrb.mxu1 %v152_v60 }
  0x3e   :  { %413 = vmatpush.msrb.mxu2 %v2409_v6  ;;  %475 = vmatpush.msrb.mxu3 %v442_v23 }
  0x3f   :  { %339 = vmatpush.msrb.mxu0 %v149_v61  ;;  %368 = vmatpush.msrb.mxu1 %v150_v62 }
  0x40   :  { %414 = vmatpush.msrb.mxu2 %v2416_v11  ;;  %v2092_v11 = vld [vmem:[%s3182_s29 + $0x50] sm:$0xff]  ;;  %476 = vmatpush.msrb.mxu3 %v440_v25 }
  0x41   :  { %340 = vmatpush.msrb.mxu0 %v147_v63  ;;  %369 = vmatpush.msrb.mxu1 %v148_v0  ;;  %v532_v0 = vld [vmem:[%s3159_s3] sm:$0x3] }
  0x42   :  { %2073 = vmatmul.msk.f32.gmra.mxu1 %vm105_vm0, %v2069_v53  ;;  %2065 = vmatmul.msk.f32.gmra.mxu0 %vm105_vm0, %v104_v54  ;;  %v534_v19 = vperm.slane %v532_v0, 0 }
  0x43   :  { %415 = vmatpush.msrb.mxu2 %v2423_v14  ;;  %v453_v14 = vld [vmem:[#allocation3 + $0x238] sm:$0xff]  ;;  %477 = vmatpush.msrb.mxu3 %v438_v27 }
  0x44   :  { %499 = vmatpush.msra.mxu0 %v453_v14 }
  0x45   :  { %478 = vmatpush.msrb.mxu3 %v436_v29 }
  0x46   :  { %500 = vmatpush.msra.mxu0 %v451_v16 }
  0x47   :  { %479 = vmatpush.msrb.mxu3 %v434_v31 }
  0x48   :  { %501 = vmatpush.msra.mxu0 %v449_v18 }
  0x49   :  { %480 = vmatpush.msrb.mxu3 %v432_v33 }
  0x4a   :  { %502 = vmatpush.msra.mxu0 %v447_v20 }
  0x4b   :  { %481 = vmatpush.msrb.mxu3 %v430_v36 }
  0x4c   :  { %503 = vmatpush.msra.mxu0 %v445_v22 }
  0x4e   :  { %504 = vmatpush.msra.mxu0 %v443_v24 }
  0x50   :  { %505 = vmatpush.msra.mxu0 %v441_v26 }
  0x52   :  { %506 = vmatpush.msra.mxu0 %v439_v28 }
  0x54   :  { %507 = vmatpush.msra.mxu0 %v437_v30 }
  0x56   :  { %508 = vmatpush.msra.mxu0 %v435_v32 }
  0x58   :  { %509 = vmatpush.msra.mxu0 %v433_v34 }
  0x5a   :  { %510 = vmatpush.msra.mxu0 %v431_v37 }
  0xa7   :  { %v205_v1 = vpop.f32.mrf.mxu1  ;;  %v135_v7 = vpop.f32.mrf.mxu0 }
  0xa8   :  { %2074 = vmatmul.msk.f32.vlgmr.msra.gmra.mxu2 %vm242_vm1, %v205_v1  ;;  %2078 = vmatmul.msk.f32.vlgmr.msra.gmra.mxu3 %vm242_vm1, %v205_v1 }
  0xa9   :  { %2082 = vmatmul.msk.f32.vlgmr.msrb.gmra.mxu0 %vm242_vm1, %v135_v7  ;;  %2086 = vmatmul.msk.f32.vlgmr.msrb.gmra.mxu1 %vm242_vm1, %v135_v7 }
  0xaf   :  { %v208_v2 = vpop.f32.mrf.mxu1  ;;  %v138_v3 = vpop.f32.mrf.mxu0 }
  0xb0   :  { %2075 = vmatmul.msk.f32.gmra.mxu2 %vm242_vm1, %v208_v2  ;;  %2079 = vmatmul.msk.f32.gmra.mxu3 %vm242_vm1, %v208_v2 }
  0xb1   :  { %2083 = vmatmul.msk.f32.gmra.mxu0 %vm242_vm1, %v138_v3  ;;  %2087 = vmatmul.msk.f32.gmra.mxu1 %vm242_vm1, %v138_v3 }
  0xb7   :  { %v211_v4 = vpop.f32.mrf.mxu1  ;;  %v141_v5 = vpop.f32.mrf.mxu0 }
  0xb8   :  { %2076 = vmatmul.msk.f32.gmra.mxu2 %vm242_vm1, %v211_v4  ;;  %2080 = vmatmul.msk.f32.gmra.mxu3 %vm242_vm1, %v211_v4 }
  0xb9   :  { %2084 = vmatmul.msk.f32.gmra.mxu0 %vm242_vm1, %v141_v5  ;;  %2088 = vmatmul.msk.f32.gmra.mxu1 %vm242_vm1, %v141_v5  ;;  %v535_v5 = vperm.slane %v532_v0, 1  ;;  %v772_v0 = vld [vmem:[#allocation5 + $0x2d8] sm:$0xff] }
  0xbf   :  { %v214_v6 = vpop.f32.mrf.mxu1  ;;  %v144_v8 = vpop.f32.mrf.mxu0 }
  0xc0   :  { %2077 = vmatmul.msk.f32.gmra.mxu2 %vm242_vm1, %v214_v6  ;;  %2081 = vmatmul.msk.f32.gmra.mxu3 %vm242_vm1, %v214_v6 }
  0xc1   :  { %2085 = vmatmul.msk.f32.gmra.mxu0 %vm242_vm1, %v144_v8  ;;  %2089 = vmatmul.msk.f32.gmra.mxu1 %vm242_vm1, %v144_v8 }
  0xc8   :  { %2094 = vmatmul.msk.f32.vlgmr.msrb.gmra.mxu2 %vm105_vm0, %v2090_v9 }
  0xd0   :  { %2095 = vmatmul.msk.f32.gmra.mxu2 %vm105_vm0, %v2091_v10 }
  0xd8   :  { %2096 = vmatmul.msk.f32.gmra.mxu2 %vm105_vm0, %v2092_v11 }
  0xe0   :  { %2097 = vmatmul.msk.f32.gmra.mxu2 %vm105_vm0, %v2093_v12  ;;  %vm1495_vm0 = vcmask 130048  }
 0x126   :  { %v342_v35 = vpop.f32.mrf.mxu0  ;;  %v371_v52 = vpop.f32.mrf.mxu1 }
 0x12b   :  { %v272_v38 = vpop.f32.mrf.mxu2  ;;  %v301_v47 = vpop.f32.mrf.mxu3 }
 0x12c   :  { %v343_v39 = vadd.f32 %v342_v35, %v272_v38  ;;  %v372_v2 = vadd.f32 %v371_v52, %v301_v47  ;;  %v803_v52 = vld [vmem:[#allocation5 + $0x3d0] sm:$0xff] }
 0x12e   :  { %v345_v48 = vpop.f32.mrf.mxu0  ;;  %v374_v55 = vpop.f32.mrf.mxu1 }
 0x133   :  { %v275_v40 = vpop.f32.mrf.mxu2  ;;  %v304_v49 = vpop.f32.mrf.mxu3 }
 0x134   :  { %v375_v1 = vadd.f32 %v374_v55, %v304_v49  ;;  %v346_v13 = vadd.f32 %v345_v48, %v275_v40  ;;  %v775_v40 = vld [vmem:[#allocation5 + $0x2f0] sm:$0xff]  ;;  %v776_v55 = vld [vmem:[#allocation5 + $0x2f8] sm:$0xff] }
 0x135   :  { %809 = vmatpush.msrb.mxu0 %v775_v40  ;;  %v771_v48 = vld [vmem:[#allocation5 + $0x2d0] sm:$0xff]  ;;  %v653_v40 = vld [vmem:[#allocation5 + $0xe0] sm:$0xff] }
 0x136   :  { %v348_v50 = vpop.f32.mrf.mxu0  ;;  %v377_v59 = vpop.f32.mrf.mxu1 }
 0x13b   :  { %v278_v41 = vpop.f32.mrf.mxu2  ;;  %v307_v51 = vpop.f32.mrf.mxu3 }
 0x13c   :  { %v378_v62 = vadd.f32 %v377_v59, %v307_v51  ;;  %v349_v10 = vadd.f32 %v348_v50, %v278_v41  ;;  %v570_v41 = vld [vmem:[%s3160_s4] sm:$0xff]  ;;  %v2545_v50 = vld [vmem:[%s3160_s4 + $0x10] sm:$0xff] }
 0x13d   :  { %v769_v51 = vld [vmem:[#allocation5 + $0x2c0] sm:$0xff]  ;;  %v799_v59 = vld [vmem:[#allocation5 + $0x3b0] sm:$0xff] }
 0x13e   :  { %v351_v53 = vpop.f32.mrf.mxu0  ;;  %v380_v63 = vpop.f32.mrf.mxu1 }
 0x143   :  { %v281_v42 = vpop.f32.mrf.mxu2  ;;  %v310_v54 = vpop.f32.mrf.mxu3 }
 0x144   :  { %v381_v4 = vadd.f32 %v380_v63, %v310_v54  ;;  %v352_v17 = vadd.f32 %v351_v53, %v281_v42  ;;  %v571_v53 = vld [vmem:[%s3160_s4 + $0x8] sm:$0xff]  ;;  %v767_v54 = vld [vmem:[#allocation5 + $0x2b0] sm:$0xff] }
 0x145   :  { %v761_v63 = vld [vmem:[#allocation5 + $0x280] sm:$0xff] }
 0x14b   :  { %v417_v43 = vpop.f32.mrf.mxu2 }
 0x14c   :  { %2098 = vmatmul.msk.f32.vlgmr.msrb.gmra.mxu3 %vm242_vm1, %v417_v43  ;;  %2102 = vmatmul.msk.f32.vlgmr.msra.gmra.mxu0 %vm242_vm1, %v417_v43 }
 0x153   :  { %v420_v44 = vpop.f32.mrf.mxu2 }
 0x154   :  { %2099 = vmatmul.msk.f32.gmra.mxu3 %vm242_vm1, %v420_v44  ;;  %2103 = vmatmul.msk.f32.gmra.mxu0 %vm242_vm1, %v420_v44  ;;  %v773_v44 = vld [vmem:[#allocation5 + $0x2e0] sm:$0xff] }
 0x155   :  { %810 = vmatpush.msrb.mxu0 %v773_v44  ;;  %v792_v44 = vld [vmem:[#allocation5 + $0x378] sm:$0xff] }
 0x157   :  { %811 = vmatpush.msrb.mxu0 %v771_v48  ;;  %v687_v48 = vld [vmem:[#allocation5 + $0x1f0] sm:$0xff] }
 0x159   :  { %812 = vmatpush.msrb.mxu0 %v769_v51  ;;  %v649_v51 = vld [vmem:[#allocation5 + $0xc0] sm:$0xff] }
 0x15b   :  { %v423_v45 = vpop.f32.mrf.mxu2  ;;  %813 = vmatpush.msrb.mxu0 %v767_v54  ;;  %v788_v54 = vld [vmem:[#allocation5 + $0x358] sm:$0xff] }
 0x15c   :  { %2100 = vmatmul.msk.f32.gmra.mxu3 %vm242_vm1, %v423_v45  ;;  %2104 = vmatmul.msk.f32.gmra.mxu0 %vm242_vm1, %v423_v45  ;;  %v807_v45 = vld [vmem:[#allocation5 + $0x3f0] sm:$0xff] }
 0x163   :  { %v426_v46 = vpop.f32.mrf.mxu2 }
 0x164   :  { %2101 = vmatmul.msk.f32.gmra.mxu3 %vm242_vm1, %v426_v46  ;;  %2105 = vmatmul.msk.f32.gmra.mxu0 %vm242_vm1, %v426_v46  ;;  %v805_v46 = vld [vmem:[#allocation5 + $0x3e0] sm:$0xff] }
 0x1c9   :  { %v512_v56 = vpop.f32.mrf.mxu0 }
 0x1ca   :  { %v525_v8 = vadd.f32 %v512_v56, %v372_v2  ;;  %v801_v56 = vld [vmem:[#allocation5 + $0x3c0] sm:$0xff]  ;;  %v759_v2 = vld [vmem:[#allocation5 + $0x270] sm:$0xff] }
 0x1cc   :  { %v539_v18 = vadd.f32 %v535_v5, %v525_v8  ;;  %v768_v8 = vld [vmem:[#allocation5 + $0x2b8] sm:$0xff] }
 0x1ce   :  { %v555_v32 = vmul.f32 0.2, %v539_v18  ;;  %vm547_vm5 = vcmp.gt.f32.partialorder %v539_v18, 0.0 }
 0x1cf   :  { %v483_v57 = vpop.f32.mrf.mxu3 }
 0x1d0   :  { %v524_v23 = vadd.f32 %v483_v57, %v343_v39  ;;  %v2523_v38 = vsel %vm547_vm5, %v539_v18, %v555_v32  ;;  %v765_v57 = vld [vmem:[#allocation5 + $0x2a0] sm:$0xff]  ;;  %v751_v18 = vld [vmem:[#allocation5 + $0x230] sm:$0xff]  ;;  %v796_v32 = vld [vmem:[#allocation5 + $0x398] sm:$0xff] }
 0x1d1   :  { %v515_v58 = vpop.f32.mrf.mxu0  ;;  %814 = vmatpush.msrb.mxu0 %v765_v57  ;;  %v683_v57 = vld [vmem:[#allocation5 + $0x1d0] sm:$0xff] }
 0x1d2   :  { %v527_v6 = vadd.f32 %v515_v58, %v375_v1  ;;  %v538_v33 = vadd.f32 %v534_v19, %v524_v23  ;;  %v774_v58 = vld [vmem:[#allocation5 + $0x2e8] sm:$0xff]  ;;  %v795_v1 = vld [vmem:[#allocation5 + $0x390] sm:$0xff] }
 0x1d3   :  { %v798_v23 = vld [vmem:[#allocation5 + $0x3a8] sm:$0xff] }
 0x1d4   :  { %v541_v14 = vadd.f32 %v535_v5, %v527_v6  ;;  %v554_v43 = vmul.f32 0.2, %v538_v33  ;;  %vm546_vm10 = vcmp.gt.f32.partialorder %v538_v33, 0.0  ;;  %v757_v6 = vld [vmem:[#allocation5 + $0x260] sm:$0xff] }
 0x1d6   :  { %v557_v28 = vmul.f32 0.2, %v541_v14  ;;  %vm549_vm4 = vcmp.gt.f32.partialorder %v541_v14, 0.0  ;;  %v2540_v49 = vsel %vm546_vm10, %v538_v33, %v554_v43  ;;  %v655_v33 = vld [vmem:[#allocation5 + $0xf0] sm:$0xff]  ;;  %v777_v43 = vld [vmem:[#allocation5 + $0x300] sm:$0xff] }
 0x1d7   :  { %v486_v60 = vpop.f32.mrf.mxu3 }
 0x1d8   :  { %v526_v20 = vadd.f32 %v486_v60, %v346_v13  ;;  %v2518_v35 = vsel %vm549_vm4, %v541_v14, %v557_v28  ;;  %v763_v60 = vld [vmem:[#allocation5 + $0x290] sm:$0xff]  ;;  %v789_v13 = vld [vmem:[#allocation5 + $0x360] sm:$0xff]  ;;  %v758_v28 = vld [vmem:[#allocation5 + $0x268] sm:$0xff] }
 0x1d9   :  { %v518_v61 = vpop.f32.mrf.mxu0  ;;  %815 = vmatpush.msrb.mxu0 %v763_v60  ;;  %v753_v14 = vld [vmem:[#allocation5 + $0x240] sm:$0xff]  ;;  %v746_v60 = vld [vmem:[#allocation5 + $0x208] sm:$0xff] }
 0x1da   :  { %v529_v7 = vadd.f32 %v518_v61, %v378_v62  ;;  %v540_v29 = vadd.f32 %v534_v19, %v526_v20  ;;  %v2562_v61 = vld [vmem:[%s3160_s4 + $0x18] sm:$0xff]  ;;  %v797_v62 = vld [vmem:[#allocation5 + $0x3a0] sm:$0xff]  ;;  %v762_v20 = vld [vmem:[#allocation5 + $0x288] sm:$0xff] }
 0x1db   :  { %816 = vmatpush.msrb.mxu0 %v761_v63  ;;  %v643_v63 = vld [vmem:[#allocation5 + $0x90] sm:$0xff] }
 0x1dc   :  { %v543_v11 = vadd.f32 %v535_v5, %v529_v7  ;;  %v556_v39 = vmul.f32 0.2, %v540_v29  ;;  %vm548_vm8 = vcmp.gt.f32.partialorder %v540_v29, 0.0  ;;  %v808_v7 = vld [vmem:[#allocation5 + $0x3f8] sm:$0xff] }
 0x1dd   :  { %817 = vmatpush.msrb.mxu0 %v759_v2  ;;  %v641_v2 = vld [vmem:[#allocation5 + $0x80] sm:$0xff] }
 0x1de   :  { %v559_v22 = vmul.f32 0.2, %v543_v11  ;;  %vm551_vm3 = vcmp.gt.f32.partialorder %v543_v11, 0.0  ;;  %v2536_v47 = vsel %vm548_vm8, %v540_v29, %v556_v39  ;;  %v781_v29 = vld [vmem:[#allocation5 + $0x320] sm:$0xff]  ;;  %v794_v39 = vld [vmem:[#allocation5 + $0x388] sm:$0xff]  ;;  %vm1999_vm8 = vcmask 1043456  }
 0x1df   :  { %v489_v3 = vpop.f32.mrf.mxu3  ;;  %818 = vmatpush.msrb.mxu0 %v757_v6  ;;  %v639_v6 = vld [vmem:[#allocation5 + $0x70] sm:$0xff] }
 0x1e0   :  { %v528_v15 = vadd.f32 %v489_v3, %v349_v10  ;;  %v2515_v31 = vsel %vm551_vm3, %v543_v11, %v559_v22  ;;  %v770_v3 = vld [vmem:[#allocation5 + $0x2c8] sm:$0xff]  ;;  %v804_v10 = vld [vmem:[#allocation5 + $0x3d8] sm:$0xff]  ;;  %v755_v11 = vld [vmem:[#allocation5 + $0x250] sm:$0xff] }
 0x1e1   :  { %v521_v9 = vpop.f32.mrf.mxu0  ;;  %819 = vmatpush.msrb.mxu0 %v755_v11  ;;  %v749_v22 = vld [vmem:[#allocation5 + $0x220] sm:$0xff] }
 0x1e2   :  { %v531_v12 = vadd.f32 %v521_v9, %v381_v4  ;;  %v542_v25 = vadd.f32 %v534_v19, %v528_v15  ;;  %v793_v4 = vld [vmem:[#allocation5 + $0x380] sm:$0xff]  ;;  %v791_v9 = vld [vmem:[#allocation5 + $0x370] sm:$0xff]  ;;  %v802_v15 = vld [vmem:[#allocation5 + $0x3c8] sm:$0xff] }
 0x1e3   :  { %820 = vmatpush.msrb.mxu0 %v753_v14  ;;  %v637_v11 = vld [vmem:[#allocation5 + $0x60] sm:$0xff]  ;;  %v631_v14 = vld [vmem:[#allocation5 + $0x30] sm:$0xff] }
 0x1e4   :  { %v545_v16 = vadd.f32 %v535_v5, %v531_v12  ;;  %v558_v36 = vmul.f32 0.2, %v542_v25  ;;  %vm550_vm7 = vcmp.gt.f32.partialorder %v542_v25, 0.0  ;;  %v806_v5 = vld [vmem:[#allocation5 + $0x3e8] sm:$0xff] }
 0x1e5   :  { %v766_v12 = vld [vmem:[#allocation5 + $0x2a8] sm:$0xff]  ;;  %821 = vmatpush.msrb.mxu0 %v751_v18  ;;  %v629_v18 = vld [vmem:[#allocation5 + $0x20] sm:$0xff] }
 0x1e6   :  { %v561_v21 = vmul.f32 0.2, %v545_v16  ;;  %vm553_vm2 = vcmp.gt.f32.partialorder %v545_v16, 0.0  ;;  %v2531_v42 = vsel %vm550_vm7, %v542_v25, %v558_v36  ;;  %v783_v25 = vld [vmem:[#allocation5 + $0x330] sm:$0xff]  ;;  %vm2014_vm7 = vcmask 1047556  }
 0x1e7   :  { %v492_v24 = vpop.f32.mrf.mxu3  ;;  %822 = vmatpush.msrb.mxu0 %v749_v22  ;;  %v779_v36 = vld [vmem:[#allocation5 + $0x310] sm:$0xff] }
 0x1e8   :  { %v530_v26 = vadd.f32 %v492_v24, %v352_v17  ;;  %v2512_v27 = vsel %vm553_vm2, %v545_v16, %v561_v21  ;;  %v764_v16 = vld [vmem:[#allocation5 + $0x298] sm:$0xff]  ;;  %v787_v17 = vld [vmem:[#allocation5 + $0x350] sm:$0xff]  ;;  %v785_v21 = vld [vmem:[#allocation5 + $0x340] sm:$0xff] }
 0x1e9   :  { %614 = vmatpush.msra.mxu2 %v2512_v27  ;;  %v760_v24 = vld [vmem:[#allocation5 + $0x278] sm:$0xff]  ;;  %v627_v22 = vld [vmem:[#allocation5 + $0x10] sm:$0xff] }
 0x1ea   :  { %v544_v30 = vadd.f32 %v534_v19, %v530_v26  ;;  %v800_v19 = vld [vmem:[#allocation5 + $0x3b8] sm:$0xff]  ;;  %v747_v26 = vld [vmem:[#allocation5 + $0x210] sm:$0xff] }
 0x1eb   :  { %615 = vmatpush.msra.mxu2 %v2515_v31  ;;  %823 = vmatpush.msrb.mxu0 %v747_v26  ;;  %v625_v26 = vld [vmem:[#allocation5] sm:$0xff] }
 0x1ec   :  { %v560_v34 = vmul.f32 0.2, %v544_v30  ;;  %vm552_vm6 = vcmp.gt.f32.partialorder %v544_v30, 0.0 }
 0x1ed   :  { %616 = vmatpush.msra.mxu2 %v2518_v35 }
 0x1ee   :  { %v2521_v37 = vsel %vm552_vm6, %v544_v30, %v560_v34  ;;  %v745_v30 = vld [vmem:[#allocation5 + $0x200] sm:$0xff]  ;;  %v756_v34 = vld [vmem:[#allocation5 + $0x258] sm:$0xff] }
 0x1ef   :  { %591 = vmatpush.msra.mxu1 %v2521_v37  ;;  %617 = vmatpush.msra.mxu2 %v2523_v38 }
 0x1f0   :  { %710 = vmatpush.msra.mxu3 %v2521_v37  ;;  %2108 = vmatmul.msk.f32.vlgmr.msra.gmra.mxu2 %vm572_vm9, %v570_v41 }
 0x1f1   :  { %592 = vmatpush.msra.mxu1 %v2531_v42  ;;  %832 = vmatpush.msrb.mxu2 %v807_v45  ;;  %v651_v45 = vld [vmem:[#allocation5 + $0xd0] sm:$0xff] }
 0x1f2   :  { %711 = vmatpush.msra.mxu3 %v2531_v42  ;;  %824 = vmatpush.msrb.mxu0 %v745_v30  ;;  %v684_v30 = vld [vmem:[#allocation5 + $0x1d8] sm:$0xff] }
 0x1f3   :  { %593 = vmatpush.msra.mxu1 %v2536_v47  ;;  %833 = vmatpush.msrb.mxu2 %v805_v46  ;;  %v752_v46 = vld [vmem:[#allocation5 + $0x238] sm:$0xff] }
 0x1f4   :  { %712 = vmatpush.msra.mxu3 %v2536_v47  ;;  %901 = vmatpush.msra.mxu0 %v655_v33  ;;  %v640_v33 = vld [vmem:[#allocation5 + $0x78] sm:$0xff] }
 0x1f5   :  { %594 = vmatpush.msra.mxu1 %v2540_v49  ;;  %834 = vmatpush.msrb.mxu2 %v803_v52  ;;  %v750_v52 = vld [vmem:[#allocation5 + $0x228] sm:$0xff] }
 0x1f6   :  { %713 = vmatpush.msra.mxu3 %v2540_v49  ;;  %2106 = vmatmul.msk.f32.vlgmr.msra.gmra.mxu1 %vm572_vm9, %v570_v41  ;;  %v754_v41 = vld [vmem:[#allocation5 + $0x248] sm:$0xff] }
 0x1f7   :  { %2112 = vmatmul.msk.f32.vlgmr.msra.gmra.mxu3 %vm572_vm9, %v2545_v50  ;;  %733 = vmatpush.msrb.mxu1 %v2512_v27 }
 0x1f8   :  { %2109 = vmatmul.msk.f32.gmra.mxu2 %vm572_vm9, %v571_v53  ;;  %855 = vmatpush.msrb.mxu3 %v776_v55  ;;  %v647_v55 = vld [vmem:[#allocation5 + $0xb0] sm:$0xff] }
 0x1f9   :  { %734 = vmatpush.msrb.mxu1 %v2515_v31  ;;  %835 = vmatpush.msrb.mxu2 %v801_v56  ;;  %v748_v56 = vld [vmem:[#allocation5 + $0x218] sm:$0xff] }
 0x1fa   :  { %856 = vmatpush.msrb.mxu3 %v774_v58  ;;  %902 = vmatpush.msra.mxu0 %v653_v40  ;;  %v786_v58 = vld [vmem:[#allocation5 + $0x348] sm:$0xff]  ;;  %v680_v40 = vld [vmem:[#allocation5 + $0x1b8] sm:$0xff] }
 0x1fb   :  { %735 = vmatpush.msrb.mxu1 %v2518_v35  ;;  %836 = vmatpush.msrb.mxu2 %v799_v59  ;;  %v645_v59 = vld [vmem:[#allocation5 + $0xa0] sm:$0xff] }
 0x1fc   :  { %857 = vmatpush.msrb.mxu3 %v772_v0  ;;  %903 = vmatpush.msra.mxu0 %v651_v45  ;;  %v784_v0 = vld [vmem:[#allocation5 + $0x338] sm:$0xff]  ;;  %v659_v45 = vld [vmem:[#allocation5 + $0x110] sm:$0xff] }
 0x1fd   :  { %736 = vmatpush.msrb.mxu1 %v2523_v38  ;;  %837 = vmatpush.msrb.mxu2 %v797_v62  ;;  %v656_v62 = vld [vmem:[#allocation5 + $0xf8] sm:$0xff] }
 0x1fe   :  { %2107 = vmatmul.msk.f32.gmra.mxu1 %vm572_vm9, %v571_v53  ;;  %858 = vmatpush.msrb.mxu3 %v770_v3  ;;  %v685_v53 = vld [vmem:[#allocation5 + $0x1e0] sm:$0xff]  ;;  %v782_v3 = vld [vmem:[#allocation5 + $0x328] sm:$0xff] }
 0x1ff   :  { %2113 = vmatmul.msk.f32.gmra.mxu3 %vm572_vm9, %v2562_v61  ;;  %838 = vmatpush.msrb.mxu2 %v795_v1  ;;  %v679_v1 = vld [vmem:[#allocation5 + $0x1b0] sm:$0xff] }
 0x200   :  { %878 = vmatpush.msra.mxu1 %v808_v7  ;;  %859 = vmatpush.msrb.mxu3 %v768_v8  ;;  %v654_v7 = vld [vmem:[#allocation5 + $0xe8] sm:$0xff]  ;;  %v780_v8 = vld [vmem:[#allocation5 + $0x318] sm:$0xff] }
 0x201   :  { %839 = vmatpush.msrb.mxu2 %v793_v4  ;;  %904 = vmatpush.msra.mxu0 %v649_v51  ;;  %v677_v4 = vld [vmem:[#allocation5 + $0x1a0] sm:$0xff]  ;;  %v632_v51 = vld [vmem:[#allocation5 + $0x38] sm:$0xff] }
 0x202   :  { %879 = vmatpush.msra.mxu1 %v806_v5  ;;  %860 = vmatpush.msrb.mxu3 %v766_v12  ;;  %v652_v5 = vld [vmem:[#allocation5 + $0xd8] sm:$0xff]  ;;  %v635_v12 = vld [vmem:[#allocation5 + $0x50] sm:$0xff] }
 0x203   :  { %840 = vmatpush.msrb.mxu2 %v791_v9  ;;  %905 = vmatpush.msra.mxu0 %v647_v55  ;;  %v675_v9 = vld [vmem:[#allocation5 + $0x190] sm:$0xff]  ;;  %v628_v55 = vld [vmem:[#allocation5 + $0x18] sm:$0xff] }
 0x204   :  { %880 = vmatpush.msra.mxu1 %v804_v10  ;;  %861 = vmatpush.msrb.mxu3 %v764_v16  ;;  %v650_v10 = vld [vmem:[#allocation5 + $0xc8] sm:$0xff]  ;;  %v648_v16 = vld [vmem:[#allocation5 + $0xb8] sm:$0xff] }
 0x205   :  { %841 = vmatpush.msrb.mxu2 %v789_v13  ;;  %906 = vmatpush.msra.mxu0 %v645_v59  ;;  %v633_v13 = vld [vmem:[#allocation5 + $0x40] sm:$0xff]  ;;  %v666_v59 = vld [vmem:[#allocation5 + $0x148] sm:$0xff] }
 0x206   :  { %2114 = vmatmul.msk.f32.vlgmr.msrb.gmra.mxu1 %vm572_vm9, %v2545_v50  ;;  %862 = vmatpush.msrb.mxu3 %v762_v20  ;;  %v790_v50 = vld [vmem:[#allocation5 + $0x368] sm:$0xff] }
 0x207   :  { %881 = vmatpush.msra.mxu1 %v802_v15  ;;  %842 = vmatpush.msrb.mxu2 %v787_v17  ;;  %v673_v15 = vld [vmem:[#allocation5 + $0x180] sm:$0xff]  ;;  %v778_v17 = vld [vmem:[#allocation5 + $0x308] sm:$0xff] }
 0x208   :  { %863 = vmatpush.msrb.mxu3 %v760_v24  ;;  %907 = vmatpush.msra.mxu0 %v643_v63  ;;  %v646_v20 = vld [vmem:[#allocation5 + $0xa8] sm:$0xff]  ;;  %v644_v24 = vld [vmem:[#allocation5 + $0x98] sm:$0xff] }
 0x209   :  { %882 = vmatpush.msra.mxu1 %v800_v19  ;;  %843 = vmatpush.msrb.mxu2 %v785_v21  ;;  %v671_v19 = vld [vmem:[#allocation5 + $0x170] sm:$0xff]  ;;  %v688_v21 = vld [vmem:[#allocation5 + $0x1f8] sm:$0xff] }
 0x20a   :  { %864 = vmatpush.msrb.mxu3 %v758_v28  ;;  %908 = vmatpush.msra.mxu0 %v641_v2  ;;  %v667_v28 = vld [vmem:[#allocation5 + $0x150] sm:$0xff] }
 0x20b   :  { %883 = vmatpush.msra.mxu1 %v798_v23  ;;  %844 = vmatpush.msrb.mxu2 %v783_v25  ;;  %v669_v23 = vld [vmem:[#allocation5 + $0x160] sm:$0xff]  ;;  %v686_v25 = vld [vmem:[#allocation5 + $0x1e8] sm:$0xff] }
 0x20c   :  { %865 = vmatpush.msrb.mxu3 %v756_v34  ;;  %909 = vmatpush.msra.mxu0 %v639_v6  ;;  %v682_v34 = vld [vmem:[#allocation5 + $0x1c8] sm:$0xff]  ;;  %v1112_v6 = vld [vmem:[#allocation5 + $0x5f8] sm:$0xff] }
 0x20d   :  { %845 = vmatpush.msrb.mxu2 %v781_v29  ;;  %884 = vmatpush.msra.mxu1 %v796_v32  ;;  %v642_v29 = vld [vmem:[#allocation5 + $0x88] sm:$0xff]  ;;  %v665_v32 = vld [vmem:[#allocation5 + $0x140] sm:$0xff] }
 0x20e   :  { %2115 = vmatmul.msk.f32.gmra.mxu1 %vm572_vm9, %v2562_v61  ;;  %866 = vmatpush.msrb.mxu3 %v754_v41  ;;  %v681_v61 = vld [vmem:[#allocation5 + $0x1c0] sm:$0xff] }
 0x20f   :  { %846 = vmatpush.msrb.mxu2 %v779_v36  ;;  %885 = vmatpush.msra.mxu1 %v794_v39  ;;  %v663_v36 = vld [vmem:[#allocation5 + $0x130] sm:$0xff]  ;;  %v638_v39 = vld [vmem:[#allocation5 + $0x68] sm:$0xff]  ;;  %v661_v41 = vld [vmem:[#allocation5 + $0x120] sm:$0xff] }
 0x210   :  { %867 = vmatpush.msrb.mxu3 %v752_v46  ;;  %910 = vmatpush.msra.mxu0 %v637_v11  ;;  %v634_v46 = vld [vmem:[#allocation5 + $0x48] sm:$0xff]  ;;  %v1080_v11 = vld [vmem:[#allocation5 + $0x4f8] sm:$0xff] }
 0x211   :  { %847 = vmatpush.msrb.mxu2 %v777_v43  ;;  %886 = vmatpush.msra.mxu1 %v792_v44  ;;  %v636_v43 = vld [vmem:[#allocation5 + $0x58] sm:$0xff]  ;;  %v678_v44 = vld [vmem:[#allocation5 + $0x1a8] sm:$0xff] }
 0x212   :  { %868 = vmatpush.msrb.mxu3 %v750_v52  ;;  %911 = vmatpush.msra.mxu0 %v635_v12  ;;  %v674_v52 = vld [vmem:[#allocation5 + $0x188] sm:$0xff] }
 0x213   :  { %924 = vmatpush.msra.mxu2 %v687_v48  ;;  %887 = vmatpush.msra.mxu1 %v790_v50  ;;  %v676_v48 = vld [vmem:[#allocation5 + $0x198] sm:$0xff]  ;;  %v657_v50 = vld [vmem:[#allocation5 + $0x100] sm:$0xff]  ;;  %v1078_v12 = vld [vmem:[#allocation5 + $0x4e8] sm:$0xff] }
 0x214   :  { %869 = vmatpush.msrb.mxu3 %v748_v56  ;;  %912 = vmatpush.msra.mxu0 %v633_v13  ;;  %v670_v56 = vld [vmem:[#allocation5 + $0x168] sm:$0xff]  ;;  %v1069_v13 = vld [vmem:[#allocation5 + $0x4a0] sm:$0xff] }
 0x215   :  { %925 = vmatpush.msra.mxu2 %v685_v53  ;;  %888 = vmatpush.msra.mxu1 %v788_v54  ;;  %v630_v53 = vld [vmem:[#allocation5 + $0x28] sm:$0xff]  ;;  %v672_v54 = vld [vmem:[#allocation5 + $0x178] sm:$0xff] }
 0x216   :  { %870 = vmatpush.msrb.mxu3 %v746_v60  ;;  %913 = vmatpush.msra.mxu0 %v631_v14  ;;  %v664_v60 = vld [vmem:[#allocation5 + $0x138] sm:$0xff]  ;;  %v1107_v14 = vld [vmem:[#allocation5 + $0x5d0] sm:$0xff] }
 0x217   :  { %926 = vmatpush.msra.mxu2 %v683_v57  ;;  %889 = vmatpush.msra.mxu1 %v786_v58  ;;  %v626_v57 = vld [vmem:[#allocation5 + $0x8] sm:$0xff]  ;;  %v668_v58 = vld [vmem:[#allocation5 + $0x158] sm:$0xff] }
 0x218   :  { %947 = vmatpush.msra.mxu3 %v656_v62  ;;  %914 = vmatpush.msra.mxu0 %v629_v18  ;;  %v660_v62 = vld [vmem:[#allocation5 + $0x118] sm:$0xff]  ;;  %v1105_v18 = vld [vmem:[#allocation5 + $0x5c0] sm:$0xff] }
 0x219   :  { %927 = vmatpush.msra.mxu2 %v681_v61  ;;  %890 = vmatpush.msra.mxu1 %v784_v0  ;;  %v662_v61 = vld [vmem:[#allocation5 + $0x128] sm:$0xff] }
 0x21a   :  { %948 = vmatpush.msra.mxu3 %v654_v7  ;;  %915 = vmatpush.msra.mxu0 %v627_v22  ;;  %v658_v0 = vld [vmem:[#allocation5 + $0x108] sm:$0xff]  ;;  %v1103_v22 = vld [vmem:[#allocation5 + $0x5b0] sm:$0xff] }
 0x21b   :  { %928 = vmatpush.msra.mxu2 %v679_v1  ;;  %891 = vmatpush.msra.mxu1 %v782_v3 }
 0x21c   :  { %949 = vmatpush.msra.mxu3 %v652_v5  ;;  %916 = vmatpush.msra.mxu0 %v625_v26  ;;  %v1111_v5 = vld [vmem:[#allocation5 + $0x5f0] sm:$0xff]  ;;  %v1102_v26 = vld [vmem:[#allocation5 + $0x5a8] sm:$0xff] }
 0x21d   :  { %929 = vmatpush.msra.mxu2 %v677_v4  ;;  %892 = vmatpush.msra.mxu1 %v780_v8  ;;  %v1073_v4 = vld [vmem:[#allocation5 + $0x4c0] sm:$0xff]  ;;  %v1071_v8 = vld [vmem:[#allocation5 + $0x4b0] sm:$0xff] }
 0x21e   :  { %950 = vmatpush.msra.mxu3 %v650_v10  ;;  %v1110_v10 = vld [vmem:[#allocation5 + $0x5e8] sm:$0xff] }
 0x21f   :  { %930 = vmatpush.msra.mxu2 %v675_v9  ;;  %893 = vmatpush.msra.mxu1 %v778_v17  ;;  %v1109_v9 = vld [vmem:[#allocation5 + $0x5e0] sm:$0xff]  ;;  %v1067_v17 = vld [vmem:[#allocation5 + $0x490] sm:$0xff] }
 0x220   :  { %951 = vmatpush.msra.mxu3 %v648_v16  ;;  %v1076_v16 = vld [vmem:[#allocation5 + $0x4d8] sm:$0xff] }
 0x221   :  { %931 = vmatpush.msra.mxu2 %v673_v15  ;;  %970 = vmatpush.msrb.mxu1 %v688_v21  ;;  %v1108_v15 = vld [vmem:[#allocation5 + $0x5d8] sm:$0xff]  ;;  %v1065_v21 = vld [vmem:[#allocation5 + $0x480] sm:$0xff] }
 0x222   :  { %952 = vmatpush.msra.mxu3 %v646_v20  ;;  %v1074_v20 = vld [vmem:[#allocation5 + $0x4c8] sm:$0xff] }
 0x223   :  { %932 = vmatpush.msra.mxu2 %v671_v19  ;;  %971 = vmatpush.msrb.mxu1 %v686_v25  ;;  %v1106_v19 = vld [vmem:[#allocation5 + $0x5c8] sm:$0xff]  ;;  %v1101_v25 = vld [vmem:[#allocation5 + $0x5a0] sm:$0xff] }
 0x224   :  { %953 = vmatpush.msra.mxu3 %v644_v24  ;;  %v1063_v24 = vld [vmem:[#allocation5 + $0x470] sm:$0xff] }
 0x225   :  { %933 = vmatpush.msra.mxu2 %v669_v23  ;;  %972 = vmatpush.msrb.mxu1 %v684_v30  ;;  %v1104_v23 = vld [vmem:[#allocation5 + $0x5b8] sm:$0xff]  ;;  %v1061_v30 = vld [vmem:[#allocation5 + $0x460] sm:$0xff] }
 0x226   :  { %954 = vmatpush.msra.mxu3 %v642_v29  ;;  %v1070_v29 = vld [vmem:[#allocation5 + $0x4a8] sm:$0xff] }
 0x227   :  { %934 = vmatpush.msra.mxu2 %v667_v28  ;;  %973 = vmatpush.msrb.mxu1 %v682_v34  ;;  %v1072_v28 = vld [vmem:[#allocation5 + $0x4b8] sm:$0xff] }
 0x228   :  { %955 = vmatpush.msra.mxu3 %v640_v33  ;;  %v1100_v33 = vld [vmem:[#allocation5 + $0x598] sm:$0xff] }
 0x229   :  { %935 = vmatpush.msra.mxu2 %v665_v32  ;;  %974 = vmatpush.msrb.mxu1 %v680_v40  ;;  %v1099_v32 = vld [vmem:[#allocation5 + $0x590] sm:$0xff]  ;;  %v1068_v34 = vld [vmem:[#allocation5 + $0x498] sm:$0xff]  ;;  %v1097_v40 = vld [vmem:[#allocation5 + $0x580] sm:$0xff] }
 0x22a   :  { %956 = vmatpush.msra.mxu3 %v638_v39  ;;  %v1059_v39 = vld [vmem:[#allocation5 + $0x450] sm:$0xff] }
 0x22b   :  { %936 = vmatpush.msra.mxu2 %v663_v36  ;;  %975 = vmatpush.msrb.mxu1 %v678_v44  ;;  %v1057_v44 = vld [vmem:[#allocation5 + $0x440] sm:$0xff] }
 0x22c   :  { %957 = vmatpush.msra.mxu3 %v636_v43  ;;  %v1066_v43 = vld [vmem:[#allocation5 + $0x488] sm:$0xff] }
 0x22d   :  { %937 = vmatpush.msra.mxu2 %v661_v41  ;;  %976 = vmatpush.msrb.mxu1 %v676_v48  ;;  %v1098_v41 = vld [vmem:[#allocation5 + $0x588] sm:$0xff]  ;;  %v1055_v48 = vld [vmem:[#allocation5 + $0x430] sm:$0xff] }
 0x22e   :  { %958 = vmatpush.msra.mxu3 %v634_v46  ;;  %v1096_v46 = vld [vmem:[#allocation5 + $0x578] sm:$0xff] }
 0x22f   :  { %938 = vmatpush.msra.mxu2 %v659_v45  ;;  %977 = vmatpush.msrb.mxu1 %v674_v52  ;;  %v1095_v45 = vld [vmem:[#allocation5 + $0x570] sm:$0xff]  ;;  %v1053_v52 = vld [vmem:[#allocation5 + $0x420] sm:$0xff] }
 0x230   :  { %959 = vmatpush.msra.mxu3 %v632_v51  ;;  %v1094_v51 = vld [vmem:[#allocation5 + $0x568] sm:$0xff] }
 0x231   :  { %939 = vmatpush.msra.mxu2 %v657_v50  ;;  %978 = vmatpush.msrb.mxu1 %v672_v54  ;;  %v1093_v50 = vld [vmem:[#allocation5 + $0x560] sm:$0xff]  ;;  %v1092_v54 = vld [vmem:[#allocation5 + $0x558] sm:$0xff] }
 0x232   :  { %960 = vmatpush.msra.mxu3 %v630_v53  ;;  %v1091_v53 = vld [vmem:[#allocation5 + $0x550] sm:$0xff] }
 0x233   :  { %979 = vmatpush.msrb.mxu1 %v670_v56  ;;  %v1062_v56 = vld [vmem:[#allocation5 + $0x468] sm:$0xff] }
 0x234   :  { %961 = vmatpush.msra.mxu3 %v628_v55  ;;  %v1064_v55 = vld [vmem:[#allocation5 + $0x478] sm:$0xff] }
 0x235   :  { %980 = vmatpush.msrb.mxu1 %v668_v58 }
 0x236   :  { %962 = vmatpush.msra.mxu3 %v626_v57  ;;  %v1060_v57 = vld [vmem:[#allocation5 + $0x458] sm:$0xff] }
 0x237   :  { %981 = vmatpush.msrb.mxu1 %v666_v59  ;;  %v1051_v59 = vld [vmem:[#allocation5 + $0x410] sm:$0xff] }
 0x239   :  { %982 = vmatpush.msrb.mxu1 %v664_v60  ;;  %v1089_v60 = vld [vmem:[#allocation5 + $0x540] sm:$0xff] }
 0x23b   :  { %983 = vmatpush.msrb.mxu1 %v662_v61  ;;  %v1090_v61 = vld [vmem:[#allocation5 + $0x548] sm:$0xff] }
 0x23d   :  { %984 = vmatpush.msrb.mxu1 %v660_v62  ;;  %v1049_v62 = vld [vmem:[#allocation5 + $0x400] sm:$0xff] }
 0x23f   :  { %985 = vmatpush.msrb.mxu1 %v658_v0  ;;  %v1088_v0 = vld [vmem:[#allocation5 + $0x538] sm:$0xff] }
 0x273   :  { %v596_v63 = vpop.f32.mrf.mxu1 }
 0x27a   :  { %v715_v1 = vpop.f32.mrf.mxu3 }
 0x27b   :  { %825 = vmatmul.f32.vlgmr.msrb.gmra.mxu0 %v715_v1  ;;  %871 = vmatmul.f32.vlgmr.msrb.gmra.mxu3 %v715_v1  ;;  %v599_v7 = vpop.f32.mrf.mxu1  ;;  %v1085_v1 = vld [vmem:[#allocation5 + $0x520] sm:$0xff] }
 0x27c   :  { %1014 = vmatpush.msrb.mxu0 %v2521_v37 }
 0x27e   :  { %1015 = vmatpush.msrb.mxu0 %v2531_v42  ;;  %v619_v42 = vpop.f32.mrf.mxu2 }
 0x280   :  { %1016 = vmatpush.msrb.mxu0 %v2536_v47 }
 0x282   :  { %1017 = vmatpush.msrb.mxu0 %v2540_v49  ;;  %v718_v2 = vpop.f32.mrf.mxu3  ;;  %v1075_v49 = vld [vmem:[#allocation5 + $0x4d0] sm:$0xff] }
 0x283   :  { %828 = vmatmul.f32.gmra.mxu0 %v718_v2  ;;  %874 = vmatmul.f32.gmra.mxu3 %v718_v2  ;;  %v738_v3 = vpop.f32.mrf.mxu1  ;;  %v1058_v2 = vld [vmem:[#allocation5 + $0x448] sm:$0xff] }
 0x284   :  { %848 = vmatmul.f32.vlgmr.msrb.gmra.mxu2 %v738_v3  ;;  %894 = vmatmul.f32.vlgmr.msra.gmra.mxu1 %v738_v3  ;;  %v1056_v3 = vld [vmem:[#allocation5 + $0x438] sm:$0xff] }
 0x285   :  { %1037 = vmatpush.msrb.mxu2 %v2512_v27  ;;  %v2116_v27 = vld [vmem:[%s3160_s4 + $0x20] sm:$0xff]  ;;  %1159 = vmatpush.msra.mxu1 %v1080_v11  ;;  %v1224_v11 = vld [vmem:[%s3164_s8 + $0x78] sm:$0xff] }
 0x286   :  { %v622_v47 = vpop.f32.mrf.mxu2 }
 0x287   :  { %1038 = vmatpush.msrb.mxu2 %v2515_v31  ;;  %v2117_v31 = vld [vmem:[%s3160_s4 + $0x28] sm:$0xff]  ;;  %1160 = vmatpush.msra.mxu1 %v1078_v12  ;;  %v1223_v12 = vld [vmem:[%s3164_s8 + $0x70] sm:$0xff] }
 0x289   :  { %1039 = vmatpush.msrb.mxu2 %v2518_v35  ;;  %v1079_v35 = vld [vmem:[#allocation5 + $0x4f0] sm:$0xff]  ;;  %1161 = vmatpush.msra.mxu1 %v1076_v16 }
 0x28a   :  { %1113 = vmatpush.msrb.mxu3 %v1079_v35  ;;  %v1239_v16 = vld [vmem:[%s3164_s8 + $0xf0] sm:$0xff] }
 0x28b   :  { %917 = vmatmul.f32.vlgmr.msra.gmra.mxu0 %v596_v63  ;;  %963 = vmatmul.f32.vlgmr.msra.gmra.mxu3 %v596_v63  ;;  %v741_v37 = vpop.f32.mrf.mxu1  ;;  %v1087_v63 = vld [vmem:[#allocation5 + $0x530] sm:$0xff] }
 0x28c   :  { %1040 = vmatpush.msrb.mxu2 %v2523_v38  ;;  %897 = vmatmul.f32.gmra.mxu1 %v741_v37  ;;  %v1077_v38 = vld [vmem:[#allocation5 + $0x4e0] sm:$0xff] }
 0x28d   :  { %851 = vmatmul.f32.gmra.mxu2 %v741_v37  ;;  %1114 = vmatpush.msrb.mxu3 %v1077_v38  ;;  %v1083_v37 = vld [vmem:[#allocation5 + $0x510] sm:$0xff] }
 0x28e   :  { %1136 = vmatpush.msra.mxu0 %v1111_v5  ;;  %1162 = vmatpush.msra.mxu1 %v1074_v20  ;;  %v1050_v5 = vld [vmem:[#allocation5 + $0x408] sm:$0xff] }
 0x28f   :  { %1115 = vmatpush.msrb.mxu3 %v1075_v49  ;;  %v1081_v49 = vld [vmem:[#allocation5 + $0x500] sm:$0xff] }
 0x290   :  { %1137 = vmatpush.msra.mxu0 %v1109_v9  ;;  %1163 = vmatpush.msra.mxu1 %v1072_v28  ;;  %v1235_v28 = vld [vmem:[%s3164_s8 + $0xd0] sm:$0xff] }
 0x291   :  { %1116 = vmatpush.msrb.mxu3 %v1073_v4  ;;  %v1082_v4 = vld [vmem:[#allocation5 + $0x508] sm:$0xff] }
 0x292   :  { %1138 = vmatpush.msra.mxu0 %v1107_v14  ;;  %1164 = vmatpush.msra.mxu1 %v1070_v29  ;;  %v1217_v29 = vld [vmem:[%s3164_s8 + $0x40] sm:$0xff] }
 0x293   :  { %920 = vmatmul.f32.gmra.mxu0 %v599_v7  ;;  %966 = vmatmul.f32.gmra.mxu3 %v599_v7  ;;  %v1086_v7 = vld [vmem:[#allocation5 + $0x528] sm:$0xff] }
 0x294   :  { %986 = vmatmul.f32.vlgmr.msrb.gmra.mxu1 %v619_v42  ;;  %1117 = vmatpush.msrb.mxu3 %v1071_v8 }
 0x295   :  { %940 = vmatmul.f32.vlgmr.msra.gmra.mxu2 %v619_v42  ;;  %1139 = vmatpush.msra.mxu0 %v1105_v18  ;;  %v1084_v42 = vld [vmem:[#allocation5 + $0x518] sm:$0xff] }
 0x296   :  { %1182 = vmatpush.msra.mxu2 %v1112_v6  ;;  %1118 = vmatpush.msrb.mxu3 %v1069_v13  ;;  %v1240_v13 = vld [vmem:[%s3164_s8 + $0xf8] sm:$0xff]  ;;  %v1221_v18 = vld [vmem:[%s3164_s8 + $0x60] sm:$0xff] }
 0x297   :  { %1140 = vmatpush.msra.mxu0 %v1103_v22  ;;  %1165 = vmatpush.msra.mxu1 %v1068_v34  ;;  %v1237_v22 = vld [vmem:[%s3164_s8 + $0xe0] sm:$0xff] }
 0x298   :  { %1183 = vmatpush.msra.mxu2 %v1110_v10  ;;  %1119 = vmatpush.msrb.mxu3 %v1067_v17  ;;  %v1238_v17 = vld [vmem:[%s3164_s8 + $0xe8] sm:$0xff] }
 0x299   :  { %1141 = vmatpush.msra.mxu0 %v1101_v25  ;;  %1166 = vmatpush.msra.mxu1 %v1066_v43  ;;  %v1236_v25 = vld [vmem:[%s3164_s8 + $0xd8] sm:$0xff] }
 0x29a   :  { %1184 = vmatpush.msra.mxu2 %v1108_v15  ;;  %1120 = vmatpush.msrb.mxu3 %v1065_v21  ;;  %v1222_v15 = vld [vmem:[%s3164_s8 + $0x68] sm:$0xff]  ;;  %v1232_v43 = vld [vmem:[%s3164_s8 + $0xb8] sm:$0xff] }
 0x29b   :  { %2118 = vmatmul.msk.f32.vlgmr.msrb.gmra.mxu0 %vm572_vm9, %v2116_v27  ;;  %1167 = vmatpush.msra.mxu1 %v1064_v55  ;;  %v1230_v55 = vld [vmem:[%s3164_s8 + $0xa8] sm:$0xff] }
 0x29c   :  { %989 = vmatmul.f32.gmra.mxu1 %v622_v47  ;;  %1185 = vmatpush.msra.mxu2 %v1106_v19  ;;  %v1220_v19 = vld [vmem:[%s3164_s8 + $0x58] sm:$0xff] }
 0x29d   :  { %943 = vmatmul.f32.gmra.mxu2 %v622_v47  ;;  %1121 = vmatpush.msrb.mxu3 %v1063_v24  ;;  %v1219_v24 = vld [vmem:[%s3164_s8 + $0x50] sm:$0xff] }
 0x29e   :  { %1186 = vmatpush.msra.mxu2 %v1104_v23  ;;  %1142 = vmatpush.msra.mxu0 %v1099_v32  ;;  %v1234_v32 = vld [vmem:[%s3164_s8 + $0xc8] sm:$0xff] }
 0x29f   :  { %1122 = vmatpush.msrb.mxu3 %v1061_v30  ;;  %1168 = vmatpush.msra.mxu1 %v1062_v56  ;;  %v1216_v30 = vld [vmem:[%s3164_s8 + $0x38] sm:$0xff]  ;;  %v1210_v56 = vld [vmem:[%s3164_s8 + $0x8] sm:$0xff] }
 0x2a0   :  { %1187 = vmatpush.msra.mxu2 %v1102_v26  ;;  %1143 = vmatpush.msra.mxu0 %v1097_v40  ;;  %v1218_v26 = vld [vmem:[%s3164_s8 + $0x48] sm:$0xff]  ;;  %v1233_v40 = vld [vmem:[%s3164_s8 + $0xc0] sm:$0xff] }
 0x2a1   :  { %1123 = vmatpush.msrb.mxu3 %v1059_v39  ;;  %1169 = vmatpush.msra.mxu1 %v1060_v57  ;;  %v1215_v39 = vld [vmem:[%s3164_s8 + $0x30] sm:$0xff]  ;;  %v1229_v57 = vld [vmem:[%s3164_s8 + $0xa0] sm:$0xff] }
 0x2a2   :  { %1188 = vmatpush.msra.mxu2 %v1100_v33  ;;  %1144 = vmatpush.msra.mxu0 %v1095_v45  ;;  %v1231_v45 = vld [vmem:[%s3164_s8 + $0xb0] sm:$0xff] }
 0x2a3   :  { %2119 = vmatmul.msk.f32.gmra.mxu0 %vm572_vm9, %v2117_v31  ;;  %1124 = vmatpush.msrb.mxu3 %v1057_v44  ;;  %v1213_v44 = vld [vmem:[%s3164_s8 + $0x20] sm:$0xff] }
 0x2a4   :  { %1189 = vmatpush.msra.mxu2 %v1098_v41  ;;  %1145 = vmatpush.msra.mxu0 %v1093_v50  ;;  %v1214_v41 = vld [vmem:[%s3164_s8 + $0x28] sm:$0xff] }
 0x2a5   :  { %2120 = vmatmul.msk.f32.vlgmr.msrb.gmra.mxu2 %vm572_vm9, %v2116_v27  ;;  %1125 = vmatpush.msrb.mxu3 %v1055_v48  ;;  %v1054_v27 = vld [vmem:[#allocation5 + $0x428] sm:$0xff] }
 0x2a6   :  { %1190 = vmatpush.msra.mxu2 %v1096_v46  ;;  %1146 = vmatpush.msra.mxu0 %v1091_v53  ;;  %v1212_v46 = vld [vmem:[%s3164_s8 + $0x18] sm:$0xff] }
 0x2a7   :  { %1126 = vmatpush.msrb.mxu3 %v1053_v52  ;;  %1170 = vmatpush.msra.mxu1 %v1058_v2 }
 0x2a8   :  { %1191 = vmatpush.msra.mxu2 %v1094_v51  ;;  %1147 = vmatpush.msra.mxu0 %v1089_v60  ;;  %v1227_v60 = vld [vmem:[%s3164_s8 + $0x90] sm:$0xff] }
 0x2a9   :  { %1127 = vmatpush.msrb.mxu3 %v1051_v59  ;;  %1171 = vmatpush.msra.mxu1 %v1056_v3  ;;  %v1228_v59 = vld [vmem:[%s3164_s8 + $0x98] sm:$0xff] }
 0x2aa   :  { %1192 = vmatpush.msra.mxu2 %v1092_v54  ;;  %1148 = vmatpush.msra.mxu0 %v1087_v63  ;;  %v1211_v54 = vld [vmem:[%s3164_s8 + $0x10] sm:$0xff] }
 0x2ab   :  { %1128 = vmatpush.msrb.mxu3 %v1049_v62  ;;  %1172 = vmatpush.msra.mxu1 %v1054_v27  ;;  %v1226_v62 = vld [vmem:[%s3164_s8 + $0x88] sm:$0xff] }
 0x2ac   :  { %1193 = vmatpush.msra.mxu2 %v1090_v61  ;;  %1149 = vmatpush.msra.mxu0 %v1085_v1 }
 0x2ad   :  { %2121 = vmatmul.msk.f32.gmra.mxu2 %vm572_vm9, %v2117_v31  ;;  %v1052_v31 = vld [vmem:[#allocation5 + $0x418] sm:$0xff]  ;;  %1241 = vmatpush.msra.mxu3 %v1224_v11 }
 0x2ae   :  { %1194 = vmatpush.msra.mxu2 %v1088_v0  ;;  %1150 = vmatpush.msra.mxu0 %v1083_v37  ;;  %v1225_v0 = vld [vmem:[%s3164_s8 + $0x80] sm:$0xff] }
 0x2af   :  { %1173 = vmatpush.msra.mxu1 %v1052_v31  ;;  %1242 = vmatpush.msra.mxu3 %v1223_v12 }
 0x2b0   :  { %1195 = vmatpush.msra.mxu2 %v1086_v7  ;;  %1151 = vmatpush.msra.mxu0 %v1081_v49 }
 0x2b1   :  { %1174 = vmatpush.msra.mxu1 %v1050_v5  ;;  %1243 = vmatpush.msra.mxu3 %v1222_v15 }
 0x2b2   :  { %1196 = vmatpush.msra.mxu2 %v1084_v42  ;;  %1264 = vmatpush.msrb.mxu0 %v1240_v13 }
 0x2b3   :  { %1300 = vmatpush.msrb.mxu1 %v1224_v11  ;;  %1244 = vmatpush.msra.mxu3 %v1221_v18 }
 0x2b4   :  { %1197 = vmatpush.msra.mxu2 %v1082_v4  ;;  %1265 = vmatpush.msrb.mxu0 %v1239_v16 }
 0x2b5   :  { %1301 = vmatpush.msrb.mxu1 %v1223_v12  ;;  %1245 = vmatpush.msra.mxu3 %v1220_v19 }
 0x2b6   :  { %1323 = vmatpush.msrb.mxu2 %v1240_v13  ;;  %1266 = vmatpush.msrb.mxu0 %v1238_v17 }
 0x2b7   :  { %1302 = vmatpush.msrb.mxu1 %v1222_v15  ;;  %1246 = vmatpush.msra.mxu3 %v1219_v24 }
 0x2b8   :  { %1324 = vmatpush.msrb.mxu2 %v1239_v16  ;;  %1267 = vmatpush.msrb.mxu0 %v1237_v22 }
 0x2b9   :  { %1303 = vmatpush.msrb.mxu1 %v1221_v18  ;;  %1247 = vmatpush.msra.mxu3 %v1218_v26 }
 0x2ba   :  { %1325 = vmatpush.msrb.mxu2 %v1238_v17  ;;  %1268 = vmatpush.msrb.mxu0 %v1236_v25 }
 0x2bb   :  { %1304 = vmatpush.msrb.mxu1 %v1220_v19  ;;  %1248 = vmatpush.msra.mxu3 %v1217_v29 }
 0x2bc   :  { %1326 = vmatpush.msrb.mxu2 %v1237_v22  ;;  %1269 = vmatpush.msrb.mxu0 %v1235_v28 }
 0x2bd   :  { %1305 = vmatpush.msrb.mxu1 %v1219_v24  ;;  %1249 = vmatpush.msra.mxu3 %v1216_v30 }
 0x2be   :  { %1327 = vmatpush.msrb.mxu2 %v1236_v25  ;;  %1270 = vmatpush.msrb.mxu0 %v1234_v32 }
 0x2bf   :  { %1306 = vmatpush.msrb.mxu1 %v1218_v26  ;;  %1250 = vmatpush.msra.mxu3 %v1215_v39 }
 0x2c0   :  { %1328 = vmatpush.msrb.mxu2 %v1235_v28  ;;  %1271 = vmatpush.msrb.mxu0 %v1233_v40 }
 0x2c1   :  { %1307 = vmatpush.msrb.mxu1 %v1217_v29  ;;  %1251 = vmatpush.msra.mxu3 %v1214_v41 }
 0x2c2   :  { %1329 = vmatpush.msrb.mxu2 %v1234_v32  ;;  %1272 = vmatpush.msrb.mxu0 %v1232_v43 }
 0x2c3   :  { %1308 = vmatpush.msrb.mxu1 %v1216_v30  ;;  %1252 = vmatpush.msra.mxu3 %v1213_v44 }
 0x2c4   :  { %1330 = vmatpush.msrb.mxu2 %v1233_v40  ;;  %1273 = vmatpush.msrb.mxu0 %v1231_v45 }
 0x2c5   :  { %1309 = vmatpush.msrb.mxu1 %v1215_v39  ;;  %1253 = vmatpush.msra.mxu3 %v1212_v46 }
 0x2c6   :  { %1331 = vmatpush.msrb.mxu2 %v1232_v43  ;;  %1274 = vmatpush.msrb.mxu0 %v1230_v55 }
 0x2c7   :  { %1310 = vmatpush.msrb.mxu1 %v1214_v41  ;;  %1254 = vmatpush.msra.mxu3 %v1211_v54 }
 0x2c8   :  { %1332 = vmatpush.msrb.mxu2 %v1231_v45  ;;  %1275 = vmatpush.msrb.mxu0 %v1229_v57 }
 0x2c9   :  { %1311 = vmatpush.msrb.mxu1 %v1213_v44  ;;  %1255 = vmatpush.msra.mxu3 %v1210_v56 }
 0x2ca   :  { %1333 = vmatpush.msrb.mxu2 %v1230_v55  ;;  %1276 = vmatpush.msrb.mxu0 %v1228_v59  ;;  %v1381_v55 = vld [vmem:[%s3165_s9 + $0x28] sm:$0xff] }
 0x2cb   :  { %1312 = vmatpush.msrb.mxu1 %v1212_v46 }
 0x2cc   :  { %1334 = vmatpush.msrb.mxu2 %v1229_v57  ;;  %1277 = vmatpush.msrb.mxu0 %v1227_v60  ;;  %v1379_v57 = vld [vmem:[%s3165_s9 + $0x18] sm:$0xff] }
 0x2cd   :  { %1313 = vmatpush.msrb.mxu1 %v1211_v54 }
 0x2ce   :  { %1335 = vmatpush.msrb.mxu2 %v1228_v59  ;;  %1278 = vmatpush.msrb.mxu0 %v1226_v62 }
 0x2cf   :  { %1314 = vmatpush.msrb.mxu1 %v1210_v56  ;;  %v1378_v56 = vld [vmem:[%s3165_s9 + $0x10] sm:$0xff] }
 0x2d0   :  { %1336 = vmatpush.msrb.mxu2 %v1227_v60  ;;  %1279 = vmatpush.msrb.mxu0 %v1225_v0  ;;  %v1376_v60 = vld [vmem:[%s3165_s9] sm:$0xff] }
 0x2d2   :  { %1337 = vmatpush.msrb.mxu2 %v1226_v62 }
 0x2d4   :  { %1338 = vmatpush.msrb.mxu2 %v1225_v0 }
 0x2f8   :  { %v2590_v36 = vpop.f32.mrf.mxu0 }
 0x2fe   :  { %v872_v51 = vpop.f32.mrf.mxu3 }
 0x300   :  { %v829_v58 = vpop.f32.mrf.mxu0 }
 0x301   :  { %v895_v52 = vpop.f32.mrf.mxu1 }
 0x302   :  { %v896_v27 = vadd.f32 %v895_v52, %v872_v51  ;;  %v1382_v51 = vld [vmem:[%s3165_s9 + $0x30] sm:$0xff]  ;;  %v1383_v52 = vld [vmem:[%s3165_s9 + $0x38] sm:$0xff] }
 0x306   :  { %v875_v53 = vpop.f32.mrf.mxu3 }
 0x307   :  { %v849_v47 = vpop.f32.mrf.mxu2 }
 0x308   :  { %v850_v35 = vadd.f32 %v849_v47, %v2590_v36  ;;  %v918_v38 = vpop.f32.mrf.mxu0 }
 0x309   :  { %v898_v61 = vpop.f32.mrf.mxu1 }
 0x30a   :  { %v919_v6 = vadd.f32 %v918_v38, %v850_v35  ;;  %v899_v11 = vadd.f32 %v898_v61, %v875_v53  ;;  %v1380_v53 = vld [vmem:[%s3165_s9 + $0x20] sm:$0xff]  ;;  %v1377_v61 = vld [vmem:[%s3165_s9 + $0x8] sm:$0xff] }
 0x30e   :  { %v964_v63 = vpop.f32.mrf.mxu3 }
 0x30f   :  { %v965_v35 = vadd.f32 %v964_v63, %v896_v27 }
 0x310   :  { %v852_v8 = vpop.f32.mrf.mxu2  ;;  %v921_v9 = vpop.f32.mrf.mxu0 }
 0x311   :  { %v853_v10 = vadd.f32 %v852_v8, %v829_v58  ;;  %v1209_v58 = vld [vmem:[%s3164_s8] sm:$0xff]  ;;  %v987_v1 = vpop.f32.mrf.mxu1 }
 0x312   :  { %1256 = vmatpush.msra.mxu3 %v1209_v58  ;;  %1315 = vmatpush.msrb.mxu1 %v1209_v58  ;;  %v988_v5 = vadd.f32 %v987_v1, %v965_v35 }
 0x313   :  { %v922_v14 = vadd.f32 %v921_v9, %v853_v10 }
 0x316   :  { %v967_v7 = vpop.f32.mrf.mxu3 }
 0x318   :  { %v941_v20 = vpop.f32.mrf.mxu2  ;;  %v1019_v21 = vpop.f32.mrf.mxu0 }
 0x319   :  { %v2620_v23 = vadd.f32 %v941_v20, %v919_v6  ;;  %1129 = vmatmul.f32.vlgmr.msrb.gmra.mxu3 %v1019_v21  ;;  %1175 = vmatmul.f32.vlgmr.msra.gmra.mxu1 %v1019_v21  ;;  %v990_v2 = vpop.f32.mrf.mxu1 }
 0x31a   :  { %1399 = vmatpush.msrb.mxu3 %v1382_v51  ;;  %1442 = vmatpush.msra.mxu1 %v1382_v51 }
 0x31c   :  { %1400 = vmatpush.msrb.mxu3 %v1380_v53  ;;  %1443 = vmatpush.msra.mxu1 %v1380_v53  ;;  %v2142_v53 = vld [vmem:[%s3167_s11 + $0x158] sm:$0xff] }
 0x31e   :  { %1401 = vmatpush.msrb.mxu3 %v1378_v56  ;;  %1444 = vmatpush.msra.mxu1 %v1378_v56  ;;  %v2160_v56 = vld [vmem:[%s3167_s11 + $0x1e8] sm:$0xff] }
 0x320   :  { %v944_v33 = vpop.f32.mrf.mxu2  ;;  %v1022_v34 = vpop.f32.mrf.mxu0  ;;  %1402 = vmatpush.msrb.mxu3 %v1376_v60  ;;  %1445 = vmatpush.msra.mxu1 %v1376_v60  ;;  %v2140_v60 = vld [vmem:[%s3167_s11 + $0x148] sm:$0xff] }
 0x321   :  { %v2643_v36 = vadd.f32 %v944_v33, %v922_v14  ;;  %1132 = vmatmul.f32.gmra.mxu3 %v1022_v34  ;;  %1178 = vmatmul.f32.gmra.mxu1 %v1022_v34  ;;  %v968_v14 = vadd.f32 %v967_v7, %v899_v11 }
 0x323   :  { %v991_v18 = vadd.f32 %v990_v2, %v968_v14  ;;  %v1373_v14 = vld [vmem:[%s3163_s7] sm:$0x1] }
 0x328   :  { %v1042_v48 = vpop.f32.mrf.mxu2 }
 0x329   :  { %1152 = vmatmul.f32.vlgmr.msra.gmra.mxu0 %v1042_v48  ;;  %1198 = vmatmul.f32.vlgmr.msra.gmra.mxu2 %v1042_v48 }
 0x32a   :  { %1419 = vmatpush.msra.mxu0 %v1383_v52 }
 0x32c   :  { %1420 = vmatpush.msra.mxu0 %v1381_v55 }
 0x32e   :  { %1421 = vmatpush.msra.mxu0 %v1379_v57 }
 0x330   :  { %v1045_v50 = vpop.f32.mrf.mxu2  ;;  %1422 = vmatpush.msra.mxu0 %v1377_v61 }
 0x331   :  { %1155 = vmatmul.f32.gmra.mxu0 %v1045_v50  ;;  %1201 = vmatmul.f32.gmra.mxu2 %v1045_v50 }
 0x396   :  { %v1176_v31 = vpop.f32.mrf.mxu1 }
 0x39c   :  { %v1130_v3 = vpop.f32.mrf.mxu3 }
 0x39e   :  { %v1179_v16 = vpop.f32.mrf.mxu1 }
 0x3a4   :  { %v1133_v4 = vpop.f32.mrf.mxu3 }
 0x3a6   :  { %v1153_v37 = vpop.f32.mrf.mxu0 }
 0x3a7   :  { %v1154_v42 = vadd.f32 %v1153_v37, %v1130_v3 }
 0x3a9   :  { %v2694_v47 = vadd.f32 %v1154_v42, %v2620_v23 }
 0x3ab   :  { %v1296_v38 = vmul.f32 %v2694_v47, %v2694_v47  ;;  %1257 = vmatmul.f32.vlgmr.msra.gmra.mxu3 %v2694_v47 }
 0x3ac   :  { %v1199_v49 = vpop.f32.mrf.mxu2  ;;  %1462 = vmatpush.msra.mxu3 %v1383_v52  ;;  %v2162_v52 = vld [vmem:[%s3167_s11 + $0x1f8] sm:$0xff] }
 0x3ad   :  { %v1200_v6 = vadd.f32 %v1199_v49, %v1176_v31  ;;  %1316 = vmatmul.f32.vlgmr.msrb.gmra.mxu1 %v1296_v38 }
 0x3ae   :  { %v1156_v8 = vpop.f32.mrf.mxu0  ;;  %1463 = vmatpush.msra.mxu3 %v1381_v55  ;;  %v2141_v55 = vld [vmem:[%s3167_s11 + $0x150] sm:$0xff] }
 0x3af   :  { %v2699_v9 = vadd.f32 %v1200_v6, %v988_v5  ;;  %v1157_v10 = vadd.f32 %v1156_v8, %v1133_v4  ;;  %v1360_v8 = vld [vmem:[%s3162_s6] sm:$0x1] }
 0x3b0   :  { %1464 = vmatpush.msra.mxu3 %v1379_v57  ;;  %v1554_v57 = vld [vmem:[%s3167_s11 + $0x78] sm:$0xff] }
 0x3b1   :  { %v1297_v12 = vmul.f32 %v2699_v9, %v2699_v9  ;;  %v2704_v13 = vadd.f32 %v1157_v10, %v2643_v36  ;;  %1280 = vmatmul.f32.vlgmr.msrb.gmra.mxu0 %v2699_v9 }
 0x3b2   :  { %1465 = vmatpush.msra.mxu3 %v1377_v61  ;;  %v1569_v61 = vld [vmem:[%s3167_s11 + $0xf0] sm:$0xff] }
 0x3b3   :  { %1260 = vmatmul.f32.gmra.mxu3 %v2704_v13  ;;  %1339 = vmatmul.f32.vlgmr.msrb.gmra.mxu2 %v1297_v12  ;;  %v1298_v15 = vmul.f32 %v2704_v13, %v2704_v13 }
 0x3b4   :  { %v1202_v17 = vpop.f32.mrf.mxu2 }
 0x3b5   :  { %v1203_v19 = vadd.f32 %v1202_v17, %v1179_v16  ;;  %1319 = vmatmul.f32.gmra.mxu1 %v1298_v15 }
 0x3b7   :  { %v2710_v20 = vadd.f32 %v1203_v19, %v991_v18 }
 0x3b9   :  { %1283 = vmatmul.f32.gmra.mxu0 %v2710_v20  ;;  %v1299_v21 = vmul.f32 %v2710_v20, %v2710_v20 }
 0x3bb   :  { %1342 = vmatmul.f32.gmra.mxu2 %v1299_v21 }
 0x42a   :  { %v1317_v24 = vpop.f32.mrf.mxu1 }
 0x42e   :  { %v1258_v22 = vpop.f32.mrf.mxu3  ;;  %v1281_v23 = vpop.f32.mrf.mxu0 }
 0x42f   :  { %v1282_v25 = vadd.f32 %v1281_v23, %v1258_v22 }
 0x431   :  { %v1287_v32 = vsel %vm572_vm9, %v1282_v25, 0.0 }
 0x432   :  { %v1320_v41 = vpop.f32.mrf.mxu1 }
 0x436   :  { %v1261_v26 = vpop.f32.mrf.mxu3  ;;  %v1284_v28 = vpop.f32.mrf.mxu0 }
 0x437   :  { %v1285_v29 = vadd.f32 %v1284_v28, %v1261_v26  ;;  %v1340_v30 = vpop.f32.mrf.mxu2 }
 0x438   :  { %v1341_v40 = vadd.f32 %v1340_v30, %v1317_v24 }
 0x439   :  { %v1288_v33 = vsel %vm572_vm9, %v1285_v29, 0.0 }
 0x43a   :  { %v1289_v34 = vadd.f32 %v1288_v33, %v1287_v32  ;;  %v1346_v48 = vsel %vm572_vm9, %v1341_v40, 0.0 }
 0x43c   :  { %v1290_v36 = vrot.slane %v1289_v34, 4 }
 0x43e   :  { %v1291_v39 = vadd.f32 %v1290_v36, %v1289_v34 }
 0x43f   :  { %v1343_v43 = vpop.f32.mrf.mxu2 }
 0x440   :  { %v1292_v44 = vrot.slane %v1291_v39, 2  ;;  %v1344_v45 = vadd.f32 %v1343_v43, %v1320_v41  ;;  %v2145_v43 = vld [vmem:[%s3167_s11 + $0x170] sm:$0xff] }
 0x442   :  { %v1293_v46 = vadd.f32 %v1292_v44, %v1291_v39  ;;  %v1347_v50 = vsel %vm572_vm9, %v1344_v45, 0.0 }
 0x443   :  { %v1348_v54 = vadd.f32 %v1347_v50, %v1346_v48  ;;  %v2143_v50 = vld [vmem:[%s3167_s11 + $0x160] sm:$0xff] }
 0x444   :  { %v1294_v58 = vrot.slane %v1293_v46, 1 }
 0x445   :  { %v1349_v59 = vrot.slane %v1348_v54, 4 }
 0x446   :  { %v1295_v63 = vadd.f32 %v1294_v58, %v1293_v46  ;;  %v2144_v46 = vld [vmem:[%s3167_s11 + $0x168] sm:$0xff]  ;;  %v1553_v58 = vld [vmem:[%s3167_s11 + $0x70] sm:$0xff] }
 0x447   :  { %v1350_v62 = vadd.f32 %v1349_v59, %v1348_v54  ;;  %v2161_v54 = vld [vmem:[%s3167_s11 + $0x1f0] sm:$0xff]  ;;  %v1570_v59 = vld [vmem:[%s3167_s11 + $0xf8] sm:$0xff] }
 0x448   :  { %v1355_v7 = vmul.f32 0.0078125, %v1295_v63  ;;  %v1552_v63 = vld [vmem:[%s3167_s11 + $0x68] sm:$0xff] }
 0x449   :  { %v1351_v0 = vrot.slane %v1350_v62, 2 }
 0x44a   :  { %v1357_v37 = vmul.f32 %v1355_v7, %v1355_v7 }
 0x44b   :  { %v1352_v1 = vadd.f32 %v1351_v0, %v1350_v62  ;;  %v2159_v62 = vld [vmem:[%s3167_s11 + $0x1e0] sm:$0xff] }
 0x44c   :  { %v2139_v0 = vld [vmem:[%s3167_s11 + $0x140] sm:$0xff] }
 0x44d   :  { %v1353_v2 = vrot.slane %v1352_v1, 1 }
 0x44f   :  { %v1354_v3 = vadd.f32 %v1353_v2, %v1352_v1  ;;  %v1568_v1 = vld [vmem:[%s3167_s11 + $0xe8] sm:$0xff]  ;;  %v1551_v2 = vld [vmem:[%s3167_s11 + $0x60] sm:$0xff] }
 0x451   :  { %v1356_v42 = vmul.f32 0.0078125, %v1354_v3  ;;  %v2138_v3 = vld [vmem:[%s3167_s11 + $0x138] sm:$0xff] }
 0x453   :  { %v1358_v27 = vsub.f32 %v1356_v42, %v1357_v37  ;;  %v1567_v37 = vld [vmem:[%s3167_s11 + $0xe0] sm:$0xff]  ;;  %v2157_v42 = vld [vmem:[%s3167_s11 + $0x1d0] sm:$0xff] }
 0x455   :  { %v1359_v31 = vmax.f32 %v1358_v27, 0.0  ;;  %v1550_v27 = vld [vmem:[%s3167_s11 + $0x58] sm:$0xff] }
 0x457   :  { %v1361_v35 = vadd.f32 1e-05, %v1359_v31  ;;  %v2137_v31 = vld [vmem:[%s3167_s11 + $0x130] sm:$0xff] }
 0x459   :  { %2205 = vrsqrt.f32 %v1361_v35  ;;  %vm1368_vm12 = vweird.f32 %v1361_v35 }
 0x45f   :  { %v2206_v38 = vpop.eup %2205 }
 0x460   :  { %v1363_v49 = vmul.f32 %v2206_v38, %v1361_v35  ;;  %vm1369_vm11 = vweird.f32 %v2206_v38  ;;  %v2156_v35 = vld [vmem:[%s3167_s11 + $0x1c8] sm:$0xff] }
 0x461   :  { %vm1370_vm13 = vmor %vm1368_vm12, %vm1369_vm11  ;;  %vm2054_vm12 = vcmask 1024  }
 0x462   :  { %v1364_v4 = vmul.f32 %v2206_v38, %v1363_v49  ;;  %v2155_v49 = vld [vmem:[%s3167_s11 + $0x1c0] sm:$0xff] }
 0x464   :  { %v1365_v5 = vmul.f32 0.5, %v1364_v4  ;;  %v2135_v4 = vld [vmem:[%s3167_s11 + $0x120] sm:$0xff] }
 0x466   :  { %v1366_v6 = vsub.f32 1.5, %v1365_v5  ;;  %v2154_v5 = vld [vmem:[%s3167_s11 + $0x1b8] sm:$0xff] }
 0x468   :  { %v1367_v10 = vmul.f32 %v2206_v38, %v1366_v6  ;;  %v2134_v6 = vld [vmem:[%s3167_s11 + $0x118] sm:$0xff] }
 0x46a   :  { %v1371_v11 = vsel %vm1370_vm13, %v2206_v38, %v1367_v10  ;;  %v2136_v38 = vld [vmem:[%s3167_s11 + $0x128] sm:$0xff]  ;;  %v2133_v10 = vld [vmem:[%s3167_s11 + $0x110] sm:$0xff] }
 0x46b   :  { %v1372_v12 = vmul.f32 %v1371_v11, %v1360_v8  ;;  %v2153_v8 = vld [vmem:[%s3167_s11 + $0x1b0] sm:$0xff]  ;;  %v2152_v11 = vld [vmem:[%s3167_s11 + $0x1a8] sm:$0xff] }
 0x46d   :  { %2122 = vmatmul.msk.f32.vlgmr.msrb.gmra.mxu3 %vm572_vm9, %v1372_v12  ;;  %2123 = vmatmul.msk.f32.vlgmr.msra.gmra.mxu0 %vm572_vm9, %v1372_v12  ;;  %v1374_v15 = vmul.f32 %v1372_v12, %v1355_v7  ;;  %v2158_v7 = vld [vmem:[%s3167_s11 + $0x1d8] sm:$0xff]  ;;  %v2132_v12 = vld [vmem:[%s3167_s11 + $0x108] sm:$0xff] }
 0x46f   :  { %v1375_v16 = vsub.f32 %v1373_v14, %v1374_v15  ;;  %v2151_v14 = vld [vmem:[%s3167_s11 + $0x1a0] sm:$0xff] }
 0x470   :  { %v2131_v15 = vld [vmem:[%s3167_s11 + $0x100] sm:$0xff] }
 0x471   :  { %2124 = vmatmul.msk.f32.vlgmr.msra.gmra.mxu1 %vm572_vm9, %v1375_v16 }
 0x475   :  { %2125 = vmatmul.msk.f32.vlgmr.msra.gmra.mxu3 %vm572_vm9, %v1375_v16  ;;  %v2150_v16 = vld [vmem:[%s3167_s11 + $0x198] sm:$0xff] }
 0x4ea   :  { %v1424_v21 = vpop.f32.mrf.mxu0 }
 0x4eb   :  { %v1471_v25 = vperm.slane %v1424_v21, 0  ;;  %v1549_v21 = vld [vmem:[%s3167_s11 + $0x50] sm:$0xff] }
 0x4ed   :  { %v1473_v33 = vmul.f32 %v1471_v25, %v2699_v9  ;;  %v1475_v34 = vmul.f32 %v1471_v25, %v2710_v20  ;;  %v1494_v20 = vld [vmem:[%s3166_s10] sm:$0xff] }
 0x4ee   :  { %v1447_v17 = vpop.f32.mrf.mxu1  ;;  %v1547_v25 = vld [vmem:[%s3167_s11 + $0x40] sm:$0xff] }
 0x4ef   :  { %v1476_v22 = vperm.slane %v1447_v17, 0  ;;  %v2149_v17 = vld [vmem:[%s3167_s11 + $0x190] sm:$0xff] }
 0x4f0   :  { %v1404_v18 = vpop.f32.mrf.mxu3 }
 0x4f1   :  { %v1470_v19 = vperm.slane %v1404_v18, 0  ;;  %v2148_v18 = vld [vmem:[%s3167_s11 + $0x188] sm:$0xff] }
 0x4f3   :  { %v1472_v23 = vmul.f32 %v1470_v19, %v2694_v47  ;;  %v1474_v24 = vmul.f32 %v1470_v19, %v2704_v13  ;;  %v2146_v47 = vld [vmem:[%s3167_s11 + $0x178] sm:$0xff]  ;;  %v2128_v13 = vld [vmem:[%s3166_s10 + $0x8] sm:$0xff]  ;;  %v2147_v19 = vld [vmem:[%s3167_s11 + $0x180] sm:$0xff] }
 0x4f5   :  { %v1478_v26 = vadd.f32 %v1476_v22, %v1472_v23  ;;  %v1480_v28 = vadd.f32 %v1476_v22, %v1474_v24  ;;  %v1566_v22 = vld [vmem:[%s3167_s11 + $0xd8] sm:$0xff]  ;;  %v1548_v23 = vld [vmem:[%s3167_s11 + $0x48] sm:$0xff]  ;;  %v1565_v24 = vld [vmem:[%s3167_s11 + $0xd0] sm:$0xff] }
 0x4f7   :  { %vm1484_vm14 = vcmp.gt.f32.partialorder %v1480_v28, 0.0  ;;  %v1488_v29 = vmul.f32 0.2, %v1480_v28  ;;  %v1486_v30 = vmul.f32 0.2, %v1478_v26  ;;  %vm1482_vm15 = vcmp.gt.f32.partialorder %v1478_v26, 0.0 }
 0x4f8   :  { %v1467_v32 = vpop.f32.mrf.mxu3 }
 0x4f9   :  { %v1477_v36 = vperm.slane %v1467_v32, 0  ;;  %v2757_v39 = vsel %vm1484_vm14, %v1480_v28, %v1488_v29  ;;  %v2767_v41 = vsel %vm1482_vm15, %v1478_v26, %v1486_v30  ;;  %v1564_v26 = vld [vmem:[%s3167_s11 + $0xc8] sm:$0xff]  ;;  %v1546_v28 = vld [vmem:[%s3167_s11 + $0x38] sm:$0xff]  ;;  %v1563_v29 = vld [vmem:[%s3167_s11 + $0xc0] sm:$0xff] }
 0x4fa   :  { %1513 = vmatpush.msrb.mxu0 %v2757_v39  ;;  %1590 = vmatpush.msra.mxu2 %v2757_v39  ;;  %v1545_v30 = vld [vmem:[%s3167_s11 + $0x30] sm:$0xff]  ;;  %v1562_v32 = vld [vmem:[%s3167_s11 + $0xb8] sm:$0xff] }
 0x4fb   :  { %v1479_v40 = vadd.f32 %v1477_v36, %v1473_v33  ;;  %v1481_v9 = vadd.f32 %v1477_v36, %v1475_v34  ;;  %v1544_v33 = vld [vmem:[%s3167_s11 + $0x28] sm:$0xff]  ;;  %v1561_v34 = vld [vmem:[%s3167_s11 + $0xb0] sm:$0xff]  ;;  %v1543_v36 = vld [vmem:[%s3167_s11 + $0x20] sm:$0xff] }
 0x4fc   :  { %1514 = vmatpush.msrb.mxu0 %v2767_v41  ;;  %1591 = vmatpush.msra.mxu2 %v2767_v41 }
 0x4fd   :  { %v1489_v44 = vmul.f32 0.2, %v1481_v9  ;;  %vm1485_vm1 = vcmp.gt.f32.partialorder %v1481_v9, 0.0  ;;  %v1487_v45 = vmul.f32 0.2, %v1479_v40  ;;  %2129 = vmatmul.msk.f32.vlgmr.msra.gmra.mxu2 %vm1495_vm0, %v2128_v13  ;;  %vm1483_vm2 = vcmp.gt.f32.partialorder %v1479_v40, 0.0  ;;  %2126 = vmatmul.msk.f32.vlgmr.msrb.gmra.mxu0 %vm1495_vm0, %v1494_v20 }
 0x4fe   :  { %1649 = vmatpush.msra.mxu0 %v2146_v47  ;;  %1689 = vmatpush.msrb.mxu2 %v1554_v57  ;;  %v1542_v47 = vld [vmem:[%s3167_s11 + $0x18] sm:$0xff] }
 0x4ff   :  { %v2782_v48 = vsel %vm1485_vm1, %v1481_v9, %v1489_v44  ;;  %v2789_v51 = vsel %vm1483_vm2, %v1479_v40, %v1487_v45  ;;  %v1541_v40 = vld [vmem:[%s3167_s11 + $0x10] sm:$0xff]  ;;  %v1558_v9 = vld [vmem:[%s3167_s11 + $0x98] sm:$0xff]  ;;  %v1556_v44 = vld [vmem:[%s3167_s11 + $0x88] sm:$0xff] }
 0x500   :  { %1650 = vmatpush.msra.mxu0 %v2145_v43  ;;  %1533 = vmatpush.msrb.mxu1 %v2782_v48  ;;  %v1539_v43 = vld [vmem:[%s3167_s11] sm:$0xff]  ;;  %v2193_v57 = vld [vmem:[%s3167_s11 + $0x2d8] sm:$0xff] }
 0x501   :  { %1610 = vmatpush.msrb.mxu3 %v2782_v48  ;;  %1690 = vmatpush.msrb.mxu2 %v1553_v58  ;;  %v1555_v45 = vld [vmem:[%s3167_s11 + $0x80] sm:$0xff]  ;;  %v2176_v58 = vld [vmem:[%s3167_s11 + $0x250] sm:$0xff] }
 0x502   :  { %1651 = vmatpush.msra.mxu0 %v2144_v46  ;;  %1534 = vmatpush.msrb.mxu1 %v2789_v51  ;;  %v2181_v46 = vld [vmem:[%s3167_s11 + $0x278] sm:$0xff] }
 0x503   :  { %1611 = vmatpush.msrb.mxu3 %v2789_v51  ;;  %2127 = vmatmul.msk.f32.vlgmr.msrb.gmra.mxu1 %vm1495_vm0, %v1494_v20  ;;  %v1557_v20 = vld [vmem:[%s3167_s11 + $0x90] sm:$0xff] }
 0x504   :  { %2130 = vmatmul.msk.f32.vlgmr.msrb.gmra.mxu3 %vm1495_vm0, %v2128_v13  ;;  %1652 = vmatpush.msra.mxu0 %v2143_v50  ;;  %v1559_v13 = vld [vmem:[%s3167_s11 + $0xa0] sm:$0xff]  ;;  %v2180_v50 = vld [vmem:[%s3167_s11 + $0x270] sm:$0xff] }
 0x505   :  { %1669 = vmatpush.msra.mxu1 %v2162_v52  ;;  %1709 = vmatpush.msra.mxu3 %v1570_v59  ;;  %v2179_v52 = vld [vmem:[%s3167_s11 + $0x268] sm:$0xff]  ;;  %v2192_v59 = vld [vmem:[%s3167_s11 + $0x2d0] sm:$0xff] }
 0x506   :  { %1653 = vmatpush.msra.mxu0 %v2142_v53  ;;  %1691 = vmatpush.msrb.mxu2 %v1552_v63  ;;  %v2195_v53 = vld [vmem:[%s3167_s11 + $0x2e8] sm:$0xff]  ;;  %v2190_v63 = vld [vmem:[%s3167_s11 + $0x2c0] sm:$0xff] }
 0x507   :  { %1670 = vmatpush.msra.mxu1 %v2161_v54  ;;  %1710 = vmatpush.msra.mxu3 %v1569_v61  ;;  %v2178_v54 = vld [vmem:[%s3167_s11 + $0x260] sm:$0xff]  ;;  %v2175_v61 = vld [vmem:[%s3167_s11 + $0x248] sm:$0xff] }
 0x508   :  { %1654 = vmatpush.msra.mxu0 %v2141_v55  ;;  %1692 = vmatpush.msrb.mxu2 %v1551_v2  ;;  %v2194_v55 = vld [vmem:[%s3167_s11 + $0x2e0] sm:$0xff]  ;;  %v2188_v2 = vld [vmem:[%s3167_s11 + $0x2b0] sm:$0xff] }
 0x509   :  { %1671 = vmatpush.msra.mxu1 %v2160_v56  ;;  %1711 = vmatpush.msra.mxu3 %v1568_v1  ;;  %v2177_v56 = vld [vmem:[%s3167_s11 + $0x258] sm:$0xff] }
 0x50a   :  { %1655 = vmatpush.msra.mxu0 %v2140_v60  ;;  %1693 = vmatpush.msrb.mxu2 %v1550_v27  ;;  %v2191_v60 = vld [vmem:[%s3167_s11 + $0x2c8] sm:$0xff]  ;;  %v2189_v1 = vld [vmem:[%s3167_s11 + $0x2b8] sm:$0xff] }
 0x50b   :  { %1672 = vmatpush.msra.mxu1 %v2159_v62  ;;  %1712 = vmatpush.msra.mxu3 %v1567_v37  ;;  %v2172_v37 = vld [vmem:[%s3167_s11 + $0x230] sm:$0xff] }
 0x50c   :  { %1656 = vmatpush.msra.mxu0 %v2139_v0  ;;  %1694 = vmatpush.msrb.mxu2 %v1549_v21  ;;  %v2174_v0 = vld [vmem:[%s3167_s11 + $0x240] sm:$0xff]  ;;  %v1859_v21 = vld [vmem:[%s3170_s14 + $0x58] sm:$0xff] }
 0x50d   :  { %1673 = vmatpush.msra.mxu1 %v2158_v7  ;;  %1713 = vmatpush.msra.mxu3 %v1566_v22  ;;  %v2173_v7 = vld [vmem:[%s3167_s11 + $0x238] sm:$0xff]  ;;  %v1858_v22 = vld [vmem:[%s3170_s14 + $0x50] sm:$0xff] }
 0x50e   :  { %1657 = vmatpush.msra.mxu0 %v2138_v3  ;;  %1695 = vmatpush.msrb.mxu2 %v1548_v23  ;;  %v1857_v23 = vld [vmem:[%s3170_s14 + $0x48] sm:$0xff] }
 0x50f   :  { %1674 = vmatpush.msra.mxu1 %v2157_v42  ;;  %1714 = vmatpush.msra.mxu3 %v1565_v24  ;;  %v2187_v42 = vld [vmem:[%s3167_s11 + $0x2a8] sm:$0xff]  ;;  %v1856_v24 = vld [vmem:[%s3170_s14 + $0x40] sm:$0xff] }
 0x510   :  { %1658 = vmatpush.msra.mxu0 %v2137_v31  ;;  %1696 = vmatpush.msrb.mxu2 %v1547_v25  ;;  %v2171_v31 = vld [vmem:[%s3167_s11 + $0x228] sm:$0xff]  ;;  %v1855_v25 = vld [vmem:[%s3170_s14 + $0x38] sm:$0xff] }
 0x511   :  { %1675 = vmatpush.msra.mxu1 %v2156_v35  ;;  %1715 = vmatpush.msra.mxu3 %v1564_v26  ;;  %v1854_v26 = vld [vmem:[%s3170_s14 + $0x30] sm:$0xff] }
 0x512   :  { %1659 = vmatpush.msra.mxu0 %v2136_v38  ;;  %1697 = vmatpush.msrb.mxu2 %v1546_v28  ;;  %v2163_v38 = vld [vmem:[%s3166_s10 + $0x10] sm:$0xff] }
 0x513   :  { %1676 = vmatpush.msra.mxu1 %v2155_v49  ;;  %1716 = vmatpush.msra.mxu3 %v1563_v29  ;;  %v2170_v49 = vld [vmem:[%s3167_s11 + $0x220] sm:$0xff]  ;;  %v1853_v29 = vld [vmem:[%s3170_s14 + $0x28] sm:$0xff] }
 0x514   :  { %1660 = vmatpush.msra.mxu0 %v2135_v4  ;;  %1698 = vmatpush.msrb.mxu2 %v1545_v30  ;;  %v2186_v4 = vld [vmem:[%s3167_s11 + $0x2a0] sm:$0xff] }
 0x515   :  { %1677 = vmatpush.msra.mxu1 %v2154_v5  ;;  %1717 = vmatpush.msra.mxu3 %v1562_v32  ;;  %v2169_v5 = vld [vmem:[%s3167_s11 + $0x218] sm:$0xff]  ;;  %v1852_v30 = vld [vmem:[%s3170_s14 + $0x20] sm:$0xff] }
 0x516   :  { %1661 = vmatpush.msra.mxu0 %v2134_v6  ;;  %1699 = vmatpush.msrb.mxu2 %v1544_v33  ;;  %v2185_v6 = vld [vmem:[%s3167_s11 + $0x298] sm:$0xff] }
 0x517   :  { %1678 = vmatpush.msra.mxu1 %v2153_v8  ;;  %1718 = vmatpush.msra.mxu3 %v1561_v34  ;;  %v2168_v8 = vld [vmem:[%s3167_s11 + $0x210] sm:$0xff]  ;;  %v1851_v32 = vld [vmem:[%s3170_s14 + $0x18] sm:$0xff] }
 0x518   :  { %1662 = vmatpush.msra.mxu0 %v2133_v10  ;;  %1700 = vmatpush.msrb.mxu2 %v1543_v36  ;;  %v2184_v10 = vld [vmem:[%s3167_s11 + $0x290] sm:$0xff] }
 0x519   :  { %1679 = vmatpush.msra.mxu1 %v2152_v11  ;;  %v2167_v11 = vld [vmem:[%s3167_s11 + $0x208] sm:$0xff] }
 0x51a   :  { %1663 = vmatpush.msra.mxu0 %v2132_v12  ;;  %1701 = vmatpush.msrb.mxu2 %v1542_v47  ;;  %v2183_v12 = vld [vmem:[%s3167_s11 + $0x288] sm:$0xff]  ;;  %v1850_v47 = vld [vmem:[%s3170_s14 + $0x10] sm:$0xff] }
 0x51b   :  { %1680 = vmatpush.msra.mxu1 %v2151_v14  ;;  %v2166_v14 = vld [vmem:[%s3167_s11 + $0x200] sm:$0xff] }
 0x51c   :  { %1664 = vmatpush.msra.mxu0 %v2131_v15  ;;  %1702 = vmatpush.msrb.mxu2 %v1541_v40  ;;  %v2182_v15 = vld [vmem:[%s3167_s11 + $0x280] sm:$0xff] }
 0x51d   :  { %1681 = vmatpush.msra.mxu1 %v2150_v16  ;;  %v1863_v16 = vld [vmem:[%s3170_s14 + $0x78] sm:$0xff]  ;;  %v1848_v40 = vld [vmem:[%s3170_s14] sm:$0xff] }
 0x51e   :  { %1748 = vmatpush.msrb.mxu0 %v2757_v39  ;;  %v1560_v39 = vld [vmem:[%s3167_s11 + $0xa8] sm:$0xff] }
 0x51f   :  { %1682 = vmatpush.msra.mxu1 %v2149_v17  ;;  %1719 = vmatpush.msra.mxu3 %v1560_v39  ;;  %v1862_v17 = vld [vmem:[%s3170_s14 + $0x70] sm:$0xff] }
 0x520   :  { %1749 = vmatpush.msrb.mxu0 %v2767_v41  ;;  %v1540_v41 = vld [vmem:[%s3167_s11 + $0x8] sm:$0xff] }
 0x521   :  { %1683 = vmatpush.msra.mxu1 %v2148_v18  ;;  %1720 = vmatpush.msra.mxu3 %v1559_v13  ;;  %v1861_v18 = vld [vmem:[%s3170_s14 + $0x68] sm:$0xff] }
 0x522   :  { %1703 = vmatpush.msrb.mxu2 %v1540_v41  ;;  %v1849_v13 = vld [vmem:[%s3170_s14 + $0x8] sm:$0xff] }
 0x523   :  { %1684 = vmatpush.msra.mxu1 %v2147_v19  ;;  %1721 = vmatpush.msra.mxu3 %v1558_v9  ;;  %v1860_v19 = vld [vmem:[%s3170_s14 + $0x60] sm:$0xff] }
 0x524   :  { %1704 = vmatpush.msrb.mxu2 %v1539_v43 }
 0x525   :  { %1768 = vmatpush.msrb.mxu1 %v2782_v48  ;;  %1722 = vmatpush.msra.mxu3 %v1557_v20  ;;  %v2197_v48 = vld [vmem:[%s3167_s11 + $0x2f8] sm:$0xff] }
 0x526   :  { %1807 = vmatpush.msra.mxu2 %v2181_v46 }
 0x527   :  { %1769 = vmatpush.msrb.mxu1 %v2789_v51  ;;  %1723 = vmatpush.msra.mxu3 %v1556_v44  ;;  %v2196_v51 = vld [vmem:[%s3167_s11 + $0x2f0] sm:$0xff] }
 0x528   :  { %1808 = vmatpush.msra.mxu2 %v2180_v50 }
 0x529   :  { %1724 = vmatpush.msra.mxu3 %v1555_v45 }
 0x52a   :  { %1809 = vmatpush.msra.mxu2 %v2179_v52 }
 0x52b   :  { %1827 = vmatpush.msrb.mxu3 %v2197_v48 }
 0x52c   :  { %1810 = vmatpush.msra.mxu2 %v2178_v54 }
 0x52d   :  { %1828 = vmatpush.msrb.mxu3 %v2196_v51 }
 0x52e   :  { %1811 = vmatpush.msra.mxu2 %v2177_v56 }
 0x52f   :  { %1829 = vmatpush.msrb.mxu3 %v2195_v53 }
 0x530   :  { %1812 = vmatpush.msra.mxu2 %v2176_v58  ;;  %v1943_v58 = vld [vmem:[%s3171_s15 + $0x18] sm:$0xff] }
 0x531   :  { %1830 = vmatpush.msrb.mxu3 %v2194_v55 }
 0x532   :  { %1813 = vmatpush.msra.mxu2 %v2175_v61 }
 0x533   :  { %1831 = vmatpush.msrb.mxu3 %v2193_v57 }
 0x534   :  { %1814 = vmatpush.msra.mxu2 %v2174_v0 }
 0x535   :  { %1832 = vmatpush.msrb.mxu3 %v2192_v59  ;;  %v1942_v59 = vld [vmem:[%s3171_s15 + $0x10] sm:$0xff] }
 0x536   :  { %1815 = vmatpush.msra.mxu2 %v2173_v7 }
 0x537   :  { %1833 = vmatpush.msrb.mxu3 %v2191_v60 }
 0x538   :  { %1816 = vmatpush.msra.mxu2 %v2172_v37 }
 0x539   :  { %1834 = vmatpush.msrb.mxu3 %v2190_v63 }
 0x53a   :  { %1817 = vmatpush.msra.mxu2 %v2171_v31 }
 0x53b   :  { %1835 = vmatpush.msrb.mxu3 %v2189_v1  ;;  %v1940_v1 = vld [vmem:[%s3171_s15] sm:$0xff] }
 0x53c   :  { %1818 = vmatpush.msra.mxu2 %v2170_v49 }
 0x53d   :  { %1836 = vmatpush.msrb.mxu3 %v2188_v2 }
 0x53e   :  { %1819 = vmatpush.msra.mxu2 %v2169_v5 }
 0x53f   :  { %1837 = vmatpush.msrb.mxu3 %v2187_v42 }
 0x540   :  { %1820 = vmatpush.msra.mxu2 %v2168_v8 }
 0x541   :  { %1838 = vmatpush.msrb.mxu3 %v2186_v4 }
 0x542   :  { %1821 = vmatpush.msra.mxu2 %v2167_v11 }
 0x543   :  { %1839 = vmatpush.msrb.mxu3 %v2185_v6 }
 0x544   :  { %1822 = vmatpush.msra.mxu2 %v2166_v14 }
 0x545   :  { %1840 = vmatpush.msrb.mxu3 %v2184_v10 }
 0x547   :  { %1841 = vmatpush.msrb.mxu3 %v2183_v12  ;;  %v1924_v12 = vld [vmem:[%s3168_s12] sm:$0x1] }
 0x549   :  { %1842 = vmatpush.msrb.mxu3 %v2182_v15 }
 0x57a   :  { %v1516_v62 = vpop.f32.mrf.mxu0 }
 0x57b   :  { %1705 = vmatmul.f32.vlgmr.msrb.gmra.mxu2 %v1516_v62  ;;  %v1941_v62 = vld [vmem:[%s3171_s15 + $0x8] sm:$0xff] }
 0x57c   :  { %1959 = vmatpush.msrb.mxu2 %v1943_v58 }
 0x57e   :  { %1960 = vmatpush.msrb.mxu2 %v1942_v59 }
 0x580   :  { %v1593_v3 = vpop.f32.mrf.mxu2  ;;  %v1536_v27 = vpop.f32.mrf.mxu1  ;;  %1961 = vmatpush.msrb.mxu2 %v1941_v62 }
 0x581   :  { %1665 = vmatmul.f32.vlgmr.msra.gmra.mxu0 %v1593_v3  ;;  %1725 = vmatmul.f32.vlgmr.msra.gmra.mxu3 %v1536_v27 }
 0x582   :  { %1864 = vmatpush.msra.mxu0 %v1863_v16  ;;  %1982 = vmatpush.msra.mxu3 %v1943_v58 }
 0x583   :  { %1962 = vmatpush.msrb.mxu2 %v1940_v1 }
 0x584   :  { %1865 = vmatpush.msra.mxu0 %v1862_v17  ;;  %1983 = vmatpush.msra.mxu3 %v1942_v59 }
 0x586   :  { %1866 = vmatpush.msra.mxu0 %v1861_v18  ;;  %1984 = vmatpush.msra.mxu3 %v1941_v62 }
 0x587   :  { %v1613_v35 = vpop.f32.mrf.mxu3 }
 0x588   :  { %1685 = vmatmul.f32.vlgmr.msra.gmra.mxu1 %v1613_v35  ;;  %1867 = vmatpush.msra.mxu0 %v1860_v19 }
 0x589   :  { %2164 = vmatmul.msk.f32.vlgmr.msrb.gmra.mxu0 %vm1495_vm0, %v2163_v38  ;;  %1892 = vmatpush.msra.mxu1 %v1863_v16 }
 0x58a   :  { %1868 = vmatpush.msra.mxu0 %v1859_v21  ;;  %1985 = vmatpush.msra.mxu3 %v1940_v1 }
 0x58b   :  { %1893 = vmatpush.msra.mxu1 %v1862_v17  ;;  %v1937_v17 = vld [vmem:[%s3169_s13] sm:$0x1] }
 0x58c   :  { %1869 = vmatpush.msra.mxu0 %v1858_v22 }
 0x58d   :  { %1894 = vmatpush.msra.mxu1 %v1861_v18 }
 0x58e   :  { %1870 = vmatpush.msra.mxu0 %v1857_v23 }
 0x58f   :  { %1895 = vmatpush.msra.mxu1 %v1860_v19 }
 0x590   :  { %2165 = vmatmul.msk.f32.vlgmr.msrb.gmra.mxu1 %vm1495_vm0, %v2163_v38  ;;  %1871 = vmatpush.msra.mxu0 %v1856_v24 }
 0x591   :  { %1896 = vmatpush.msra.mxu1 %v1859_v21 }
 0x592   :  { %1872 = vmatpush.msra.mxu0 %v1855_v25 }
 0x593   :  { %1897 = vmatpush.msra.mxu1 %v1858_v22 }
 0x594   :  { %1873 = vmatpush.msra.mxu0 %v1854_v26 }
 0x595   :  { %1898 = vmatpush.msra.mxu1 %v1857_v23 }
 0x596   :  { %1874 = vmatpush.msra.mxu0 %v1853_v29 }
 0x597   :  { %1899 = vmatpush.msra.mxu1 %v1856_v24 }
 0x598   :  { %1875 = vmatpush.msra.mxu0 %v1852_v30 }
 0x599   :  { %1900 = vmatpush.msra.mxu1 %v1855_v25 }
 0x59a   :  { %1876 = vmatpush.msra.mxu0 %v1851_v32 }
 0x59b   :  { %1901 = vmatpush.msra.mxu1 %v1854_v26  ;;  %v1997_v26 = vld [vmem:[%s3172_s16] sm:$0xf] }
 0x59c   :  { %1877 = vmatpush.msra.mxu0 %v1850_v47 }
 0x59d   :  { %1902 = vmatpush.msra.mxu1 %v1853_v29  ;;  %v2011_v29 = vrot.slane %v1997_v26, 4 }
 0x59e   :  { %1878 = vmatpush.msra.mxu0 %v1849_v13 }
 0x59f   :  { %1903 = vmatpush.msra.mxu1 %v1852_v30 }
 0x5a0   :  { %1879 = vmatpush.msra.mxu0 %v1848_v40 }
 0x5a1   :  { %1904 = vmatpush.msra.mxu1 %v1851_v32 }
 0x5a3   :  { %1905 = vmatpush.msra.mxu1 %v1850_v47 }
 0x5a5   :  { %1906 = vmatpush.msra.mxu1 %v1849_v13 }
 0x5a7   :  { %1907 = vmatpush.msra.mxu1 %v1848_v40 }
 0x5fe   :  { %v1666_v28 = vpop.f32.mrf.mxu0  ;;  %v1706_v9 = vpop.f32.mrf.mxu2 }
 0x604   :  { %v1726_v41 = vpop.f32.mrf.mxu3 }
 0x605   :  { %v1686_v33 = vpop.f32.mrf.mxu1 }
 0x606   :  { %v1687_v34 = vadd.f32 %v1686_v33, %v1666_v28  ;;  %v1751_v36 = vpop.f32.mrf.mxu0 }
 0x607   :  { %1823 = vmatmul.f32.vlgmr.msra.gmra.mxu2 %v1751_v36 }
 0x608   :  { %v1707_v20 = vadd.f32 %v1706_v9, %v1687_v34 }
 0x60a   :  { %v1727_v45 = vadd.f32 %v1726_v41, %v1707_v20 }
 0x60d   :  { %v1771_v39 = vpop.f32.mrf.mxu1 }
 0x60e   :  { %1843 = vmatmul.f32.vlgmr.msrb.gmra.mxu3 %v1771_v39 }
 0x68a   :  { %v1824_v43 = vpop.f32.mrf.mxu2 }
 0x691   :  { %v1844_v44 = vpop.f32.mrf.mxu3 }
 0x692   :  { %v1845_v46 = vadd.f32 %v1844_v44, %v1824_v43 }
 0x694   :  { %v1847_v48 = vadd.f32 %v1845_v46, %v1727_v45 }
 0x696   :  { %v1891_v50 = vmul.f32 %v1847_v48, %v1847_v48  ;;  %1880 = vmatmul.f32.vlgmr.msra.gmra.mxu0 %v1847_v48 }
 0x698   :  { %1908 = vmatmul.f32.vlgmr.msra.gmra.mxu1 %v1891_v50 }
 0x713   :  { %v1881_v51 = vpop.f32.mrf.mxu0 }
 0x714   :  { %v1884_v52 = vsel %vm572_vm9, %v1881_v51, 0.0 }
 0x715   :  { %v1885_v53 = vrot.slane %v1884_v52, 4  ;;  %v1909_v54 = vpop.f32.mrf.mxu1 }
 0x716   :  { %v1912_v55 = vsel %vm572_vm9, %v1909_v54, 0.0  ;;  %v2204_v54 = vld [vmem:[#allocation2] ss:$0 sm:$0xff] }
 0x717   :  { %v1886_v56 = vadd.f32 %v1885_v53, %v1884_v52  ;;  %v1913_v57 = vrot.slane %v1912_v55, 4 }
 0x719   :  { %v1887_v60 = vrot.slane %v1886_v56, 2  ;;  %v1914_v61 = vadd.f32 %v1913_v57, %v1912_v55 }
 0x71b   :  { %v1888_v63 = vadd.f32 %v1887_v60, %v1886_v56  ;;  %v1915_v0 = vrot.slane %v1914_v61, 2 }
 0x71d   :  { %v1889_v7 = vrot.slane %v1888_v63, 1  ;;  %v1916_v2 = vadd.f32 %v1915_v0, %v1914_v61 }
 0x71f   :  { %v1890_v3 = vadd.f32 %v1889_v7, %v1888_v63  ;;  %v1917_v37 = vrot.slane %v1916_v2, 1 }
 0x721   :  { %v1919_v42 = vmul.f32 0.03125, %v1890_v3  ;;  %v1918_v27 = vadd.f32 %v1917_v37, %v1916_v2 }
 0x723   :  { %v1921_v31 = vmul.f32 %v1919_v42, %v1919_v42  ;;  %v1920_v35 = vmul.f32 0.03125, %v1918_v27 }
 0x725   :  { %v1922_v38 = vsub.f32 %v1920_v35, %v1921_v31 }
 0x727   :  { %v1923_v49 = vmax.f32 %v1922_v38, 0.0 }
 0x729   :  { %v1925_v4 = vadd.f32 1e-05, %v1923_v49 }
 0x72b   :  { %2207 = vrsqrt.f32 %v1925_v4  ;;  %vm1932_vm4 = vweird.f32 %v1925_v4 }
 0x731   :  { %v2208_v5 = vpop.eup %2207 }
 0x732   :  { %v1927_v6 = vmul.f32 %v2208_v5, %v1925_v4  ;;  %vm1933_vm3 = vweird.f32 %v2208_v5 }
 0x733   :  { %vm1934_vm5 = vmor %vm1932_vm4, %vm1933_vm3 }
 0x734   :  { %v1928_v8 = vmul.f32 %v2208_v5, %v1927_v6 }
 0x736   :  { %v1929_v10 = vmul.f32 0.5, %v1928_v8 }
 0x738   :  { %v1930_v11 = vsub.f32 1.5, %v1929_v10 }
 0x73a   :  { %v1931_v14 = vmul.f32 %v2208_v5, %v1930_v11 }
 0x73c   :  { %v1935_v15 = vsel %vm1934_vm5, %v2208_v5, %v1931_v14 }
 0x73d   :  { %v1936_v16 = vmul.f32 %v1935_v15, %v1924_v12 }
 0x73f   :  { %2198 = vmatmul.msk.f32.vlgmr.msrb.gmra.mxu2 %vm572_vm9, %v1936_v16  ;;  %v1938_v18 = vmul.f32 %v1936_v16, %v1919_v42 }
 0x741   :  { %v1939_v19 = vsub.f32 %v1937_v17, %v1938_v18 }
 0x743   :  { %2199 = vmatmul.msk.f32.vlgmr.msra.gmra.mxu3 %vm572_vm9, %v1939_v19  ;;  %vm2028_vm9 = vcmask 1040384  }
 0x7c2   :  { %v1964_v21 = vpop.f32.mrf.mxu2 }
 0x7c3   :  { %v1990_v22 = vperm.slane %v1964_v21, 0 }
 0x7c5   :  { %v1991_v24 = vmul.f32 %v1990_v22, %v1847_v48 }
 0x7c6   :  { %v1987_v23 = vpop.f32.mrf.mxu3 }
 0x7c7   :  { %v1992_v25 = vperm.slane %v1987_v23, 0 }
 0x7c9   :  { %v1993_v28 = vadd.f32 %v1992_v25, %v1991_v24 }
 0x7cb   :  { %v1995_v30 = vmul.f32 0.2, %v1993_v28  ;;  %vm1994_vm6 = vcmp.gt.f32.partialorder %v1993_v28, 0.0 }
 0x7cd   :  { %v1996_v32 = vsel %vm1994_vm6, %v1993_v28, %v1995_v30 }
 0x7ce   :  { %v2013_v33 = vmul.f32 %v2011_v29, %v1996_v32  ;;  %v1998_v36 = vmul.f32 %v1997_v26, %v1996_v32 }
 0x7d0   :  { %v2015_v34 = vsel %vm2014_vm7, %v2013_v33, 0.0  ;;  %v2000_v39 = vsel %vm1999_vm8, %v1998_v36, 0.0 }
 0x7d1   :  { %2016 = vadd.xlane.f32.xlu0 %v2015_v34 }
 0x7d9   :  { %2001 = vadd.xlane.f32.xlu0 %v2000_v39 }
 0x844   :  { %v2017_v47 = vpop.xlane.xlu0 %2016 }
 0x845   :  { %v2019_v13 = vrot.slane %v2017_v47, 4 }
 0x847   :  { %v2021_v40 = vsel %vm1999_vm8, %v2019_v13, 0.0 }
 0x848   :  { %v2022_v9 = vrot.slane %v2021_v40, 4 }
 0x84a   :  { %v2023_v41 = vadd.f32 %v2022_v9, %v2021_v40 }
 0x84c   :  { %v2024_v20 = vrot.slane %v2023_v41, 2  ;;  %v2002_v43 = vpop.xlane.xlu0 %2001 }
 0x84d   :  { %v2003_v44 = vsel %vm1999_vm8, %v2002_v43, 0.0 }
 0x84e   :  { %v2004_v45 = vrot.slane %v2003_v44, 4  ;;  %v2025_v46 = vadd.f32 %v2024_v20, %v2023_v41 }
 0x850   :  { %v2005_v48 = vadd.f32 %v2004_v45, %v2003_v44  ;;  %v2026_v51 = vrot.slane %v2025_v46, 1 }
 0x852   :  { %v2006_v50 = vrot.slane %v2005_v48, 2  ;;  %v2027_v55 = vadd.f32 %v2026_v51, %v2025_v46 }
 0x854   :  { %v2007_v52 = vadd.f32 %v2006_v50, %v2005_v48 }
 0x856   :  { %v2008_v53 = vrot.slane %v2007_v52, 1 }
 0x858   :  { %v2009_v56 = vadd.f32 %v2008_v53, %v2007_v52 }
 0x85a   :  { %v2029_v57 = vsel %vm2028_vm9, %v2009_v56, %v2027_v55 }
 0x85b   :  { %v2034_v58 = vadd.f32 %v2204_v54, %v2029_v57 }
 0x85d   :  { %v2035_v59 = vsub.f32 0.0, %v2034_v58 }
 0x85f   :  { %v2036_v60 = vmul.f32 1.442695, %v2035_v59 }
 0x861   :  { %2209 = vpow2.f32 %v2036_v60 }
 0x867   :  { %v2210_v61 = vpop.eup %2209 }
 0x868   :  { %v2038_v62 = vadd.f32 1.0, %v2210_v61 }
 0x86a   :  { %2211 = vrcp.f32 %v2038_v62  ;;  %v2050_v7 = vand.u32 2147483648, %v2038_v62  ;;  %v2048_v3 = vand.u32 2147483647, %v2038_v62  ;;  %vm2044_vm11 = vweird.f32 %v2038_v62 }
 0x86c   :  { %v2051_v42 = vor.u32 1.1754944e-38, %v2050_v7  ;;  %vm2049_vm14 = vcmp.eq.f32.partialorder %v2048_v3, 8.507059e+37 }
 0x870   :  { %v2212_v63 = vpop.eup %2211 }
 0x871   :  { %v2040_v0 = vmul.f32 %v2212_v63, %v2038_v62  ;;  %vm2045_vm10 = vweird.f32 %v2212_v63 }
 0x872   :  { %vm2046_vm13 = vmor %vm2044_vm11, %vm2045_vm10 }
 0x873   :  { %v2041_v1 = vsub.f32 1.0, %v2040_v0 }
 0x875   :  { %v2042_v2 = vmul.f32 %v2212_v63, %v2041_v1 }
 0x877   :  { %v2043_v37 = vadd.f32 %v2212_v63, %v2042_v2 }
 0x879   :  { %v2047_v27 = vsel %vm2046_vm13, %v2212_v63, %v2043_v37 }
 0x87a   :  { %v2052_v31 = vsel %vm2049_vm14, %v2051_v42, %v2047_v27 }
 0x87b   :  { %2055 = vst.msk [vmem:[%s3174_s18] sm:$0x3] %vm2054_vm12, %v2052_v31 }
 0x87c   :  { %2060 = vsyncpa [#allocation4], 1 }
 0x87d   :  { %2061 = vsyncpa [#allocation6], 1 }

</bundles_post_ra>
